<compile_context>
chip_gen: v7x
topology: tpu7x:2x2x1
jax: 0.10.0
libtpu: 0.0.40
codegen_flags: <defaults>
</compile_context>

<pallas_src>
import functools
import math

import jax
import jax.numpy as jnp
import numpy as np
from jax import lax
from jax.experimental import pallas as pl
from jax.experimental.pallas import tpu as pltpu

# Make the plain-JAX reference and the in-kernel f32 matmuls use the same
# (full f32) MXU path so the gather-as-matmul stand-in is bit-faithful.
jax.config.update("jax_default_matmul_precision", "highest")

EMBED_DIM = 32
NUM_HEADS = 4
HEAD_DIM = EMBED_DIM // NUM_HEADS
VOCAB = 128
BATCH = 2
S_ENC = 8
S_DEC = 8


def _qamaker_kernel(enc_ids_ref, dec_ids_ref, enc_mask_ref, dec_mask_ref,
                    emb_ref, wenc_ref, benc_ref, wd_ref, bd_ref,
                    wq_ref, bq_ref, wo_ref, bo_ref,
                    last_sel_ref, rep_sel_ref, group_sel_ref,
                    hmask_ref, smask_ref,
                    se_ref, dec_out_ref,
                    *, B, S, T, E, V, scale, se_lanes):
    f32 = jnp.float32
    BS = B * S
    BT = B * T
    dn_t = (((1,), (1,)), ((), ()))   # contract last axis of BOTH operands (no .T / XLU)

    # --- fused BART stand-in: embedding gather as lane-dense one-hot matmuls -
    vlane_e = lax.broadcasted_iota(jnp.int32, (BS, V), 1)
    enc_onehot = (vlane_e == enc_ids_ref[...]).astype(f32)                 # (B*S, V)
    enc_h = jnp.dot(enc_onehot, emb_ref[...], preferred_element_type=f32,
                    precision=lax.Precision.HIGHEST) * enc_mask_ref[...]   # (B*S, E)

    vlane_d = lax.broadcasted_iota(jnp.int32, (BT, V), 1)
    dec_onehot = (vlane_d == dec_ids_ref[...]).astype(f32)                 # (B*T, V)
    dec_h = jnp.dot(dec_onehot, emb_ref[...], preferred_element_type=f32,
                    precision=lax.Precision.HIGHEST) * dec_mask_ref[...]   # (B*T, E)

    # --- decoder vocab head: one lane-dense (B*T, V) = (16, 128) matmul ------
    dec_out_ref[...] = (jnp.dot(dec_h, wd_ref[...],
                                preferred_element_type=f32) + bd_ref[...])

    # --- packed encoder-side projections: kp | vp | start_h | end_h ----------
    enc_proj = jnp.dot(enc_h, wenc_ref[...],
                       preferred_element_type=f32) + benc_ref[...]         # (B*S, 4E)
    kp = enc_proj[:, 0 * E:1 * E]
    vp = enc_proj[:, 1 * E:2 * E]
    sh = enc_proj[:, 2 * E:3 * E]
    eh = enc_proj[:, 3 * E:4 * E]

    # --- q in-projection only on the B last decoder positions ----------------
    q_last = jnp.dot(last_sel_ref[...], dec_h, preferred_element_type=f32)  # (B, E)
    qp = jnp.dot(q_last, wq_ref[...], preferred_element_type=f32) + bq_ref[...]

    # --- all batches x all heads in one block-diagonal-masked attention ------
    qrep = jnp.dot(rep_sel_ref[...], qp, preferred_element_type=f32)        # (B*H, E)
    qh = hmask_ref[...] * (qrep * scale)                                    # head-owned lanes
    scores = lax.dot_general(qh, kp, dn_t, preferred_element_type=f32)      # (B*H, B*S)
    scores = scores + smask_ref[...]                                        # -1e30 cross-batch
    m = jnp.max(scores, axis=-1, keepdims=True)
    p = jnp.exp(scores - m)
    p = p / jnp.sum(p, axis=-1, keepdims=True)           # exact softmax denominator
    pv = jnp.dot(p, vp, preferred_element_type=f32)                         # (B*H, E)
    mh = jnp.dot(group_sel_ref[...], pv * hmask_ref[...],
                 preferred_element_type=f32)                                # (B, E) concat heads
    attn = jnp.dot(mh, wo_ref[...], preferred_element_type=f32) + bo_ref[...]

    # --- span logits: two dot_generals, one lane-dense (B, se_lanes) store ---
    start_full = lax.dot_general(attn, sh, dn_t, preferred_element_type=f32)  # (B, B*S)
    end_full = lax.dot_general(attn, eh, dn_t, preferred_element_type=f32)    # (B, B*S)
    parts = [start_full, end_full]
    if se_lanes > 2 * BS:
        parts.append(jnp.zeros((B, se_lanes - 2 * BS), f32))
    se_ref[...] = jnp.concatenate(parts, axis=1)                            # (B, 128) single store


def onestop_qamaker_pallas(encoder_input_ids, encoder_attention_mask,
                           decoder_input_ids, decoder_attention_mask,
                           embed_table, params, num_heads=NUM_HEADS):
    """Full fused forward: (ids, masks, embed table, head params) -> logits."""
    B, S = encoder_input_ids.shape
    T = decoder_input_ids.shape[1]
    V, E = embed_table.shape
    H = num_heads
    head_dim = E // H
    scale = 1.0 / math.sqrt(head_dim)
    BS, BT = B * S, B * T
    se_lanes = max(128, ((2 * BS + 127) // 128) * 128)   # lane-dense span-logit slab

    # ---- weight packing (wrapper-side layout plumbing, not compute) ---------
    # encoder side: kp | vp | start_h | end_h  -> (E, 4E) = (32, 128)
    w_enc = jnp.concatenate([params["wk_t"], params["wv_t"],
                             params["ws_t"], params["we_t"]], axis=1)
    b_enc = jnp.concatenate([params["bk"], params["bv"],
                             params["bs"], params["be"]]).reshape(1, 4 * E)
    w_d = params["wd_t"]                       # (E, V) = (32, 128), lane-dense vocab head
    b_d = params["bd"].reshape(1, V)
    w_q = params["wq_t"]                       # (E, E) applied only to B last-decoder rows
    b_q = params["bq"].reshape(1, E)
    w_o = params["wo_t"]
    b_o = params["bo"].reshape(1, E)

    # ---- tiny constant selection / mask matrices (host-side, no kernel work) -
    rows = np.arange(B * H)
    rep_sel = (rows[:, None] // H == np.arange(B)[None, :]).astype(np.float32)    # (B*H, B)
    group_sel = np.ascontiguousarray(rep_sel.T)                                   # (B, B*H)
    heads = rows % H
    lanes = np.arange(E)
    hmask_full = ((lanes[None, :] >= heads[:, None] * head_dim) &
                  (lanes[None, :] < (heads[:, None] + 1) * head_dim)
                  ).astype(np.float32)                                            # (B*H, E)
    cols = np.arange(BS)
    smask = np.where((rows[:, None] // H) == (cols[None, :] // S),
                     0.0, -1e30).astype(np.float32)                               # (B*H, B*S)
    last_sel = np.zeros((B, BT), np.float32)
    last_sel[np.arange(B), np.arange(B) * T + (T - 1)] = 1.0                      # (B, B*T)

    enc_ids = encoder_input_ids.reshape(BS, 1).astype(jnp.int32)
    dec_ids = decoder_input_ids.reshape(BT, 1).astype(jnp.int32)
    enc_mask = encoder_attention_mask.reshape(BS, 1).astype(jnp.float32)
    dec_mask = decoder_attention_mask.reshape(BT, 1).astype(jnp.float32)

    inputs = (enc_ids, dec_ids, enc_mask, dec_mask, jnp.asarray(embed_table),
              w_enc, b_enc, w_d, b_d, w_q, b_q, w_o, b_o,
              jnp.asarray(last_sel), jnp.asarray(rep_sel),
              jnp.asarray(group_sel), jnp.asarray(hmask_full), jnp.asarray(smask))

    # ---- advisory cost estimate (kernel is launch/latency bound) ------------
    flops = 2 * (BS * V * E +        # encoder one-hot embedding gather
                 BT * V * E +        # decoder one-hot embedding gather
                 BS * E * 4 * E +    # packed encoder projections
                 BT * E * V +        # vocab head
                 B * BT * E +        # last-position selection
                 B * E * E +         # q in-projection
                 B * H * B * E +     # per-head query replication
                 B * H * E * BS +    # attention scores
                 B * H * BS * E +    # P @ V
                 B * B * H * E +     # head collapse
                 B * E * E +         # out-projection
                 2 * B * E * BS)     # start/end span logits
    in_bytes = sum(int(np.prod(x.shape)) * 4 for x in inputs)
    out_bytes = 4 * (B * se_lanes + BT * V)
    cost = pl.CostEstimate(flops=int(flops), transcendentals=int(B * H * BS),
                           bytes_accessed=int(in_bytes + out_bytes))

    # VMEM budget guard: everything is resident single-buffered (no grid) —
    # keep it well under the v7x 32 MiB scoped default before adding a grid.
    assert in_bytes + out_bytes < 32 * 1024 * 1024

    vspec = pl.BlockSpec(memory_space=pltpu.MemorySpace.VMEM)
    kernel = functools.partial(_qamaker_kernel, B=B, S=S, T=T, E=E, V=V,
                               scale=scale, se_lanes=se_lanes)
    se, dec_out = pl.pallas_call(
        kernel,
        out_shape=(jax.ShapeDtypeStruct((B, se_lanes), jnp.float32),
                   jax.ShapeDtypeStruct((BT, V), jnp.float32)),
        in_specs=[vspec] * len(inputs),
        out_specs=(vspec, vspec),
        cost_estimate=cost,
    )(*inputs)

    # Wrapper-side extraction of the block-diagonal span logits (tiny, plain XLA).
    idx = (jnp.arange(B) * S)[:, None] + jnp.arange(S)[None, :]
    start_logits = jnp.take_along_axis(se[:, :BS], idx, axis=1)
    end_logits = jnp.take_along_axis(se[:, BS:2 * BS], idx, axis=1)
    return start_logits, end_logits, dec_out.reshape(B, T, V)


def onestop_qamaker_ref(enc_h, dec_h, p):
    """Pure-JAX reference mirroring the PyTorch post-BART forward."""
    B, S, E = enc_h.shape
    q = dec_h[:, -1:, :]                                       # (B, 1, E)
    qp = q @ p["wq_t"] + p["bq"]
    kp = enc_h @ p["wk_t"] + p["bk"]
    vp = enc_h @ p["wv_t"] + p["bv"]
    qp = qp.reshape(B, 1, NUM_HEADS, HEAD_DIM).transpose(0, 2, 1, 3)
    kp = kp.reshape(B, S, NUM_HEADS, HEAD_DIM).transpose(0, 2, 1, 3)
    vp = vp.reshape(B, S, NUM_HEADS, HEAD_DIM).transpose(0, 2, 1, 3)
    scores = jnp.einsum("bhqd,bhkd->bhqk", qp, kp) / math.sqrt(HEAD_DIM)
    w = jax.nn.softmax(scores, axis=-1)
    ao = jnp.einsum("bhqk,bhkd->bhqd", w, vp)
    ao = ao.transpose(0, 2, 1, 3).reshape(B, 1, E)
    ao = (ao @ p["wo_t"] + p["bo"])[:, 0, :]                   # (B, E)
    start_h = enc_h @ p["ws_t"] + p["bs"]
    end_h = enc_h @ p["we_t"] + p["be"]
    start = jnp.einsum("bse,be->bs", start_h, ao)
    end = jnp.einsum("bse,be->bs", end_h, ao)
    dec_out = dec_h @ p["wd_t"] + p["bd"]
    return start, end, dec_out


if __name__ == "__main__":
    key = jax.random.PRNGKey(0)
    ks = jax.random.split(key, 20)

    def w(k, shape, scale=0.05):
        return (scale * jax.random.normal(k, shape)).astype(jnp.float32)

    params = {
        # MultiheadAttention in_proj (split into q/k/v), transposed to (in, out)
        "wq_t": w(ks[0], (EMBED_DIM, EMBED_DIM)),
        "wk_t": w(ks[1], (EMBED_DIM, EMBED_DIM)),
        "wv_t": w(ks[2], (EMBED_DIM, EMBED_DIM)),
        "bq": w(ks[3], (EMBED_DIM,)),
        "bk": w(ks[4], (EMBED_DIM,)),
        "bv": w(ks[5], (EMBED_DIM,)),
        # MultiheadAttention out_proj
        "wo_t": w(ks[6], (EMBED_DIM, EMBED_DIM)),
        "bo": w(ks[7], (EMBED_DIM,)),
        # fc_start / fc_end
        "ws_t": w(ks[8], (EMBED_DIM, EMBED_DIM)),
        "bs": w(ks[9], (EMBED_DIM,)),
        "we_t": w(ks[10], (EMBED_DIM, EMBED_DIM)),
        "be": w(ks[11], (EMBED_DIM,)),
        # decoder_out: Linear(embed_dim, vocab)
        "wd_t": w(ks[12], (EMBED_DIM, VOCAB)),
        "bd": w(ks[13], (VOCAB,)),
    }

    # Module-level inputs (token ids + attention masks).
    encoder_input_ids = jax.random.randint(ks[14], (BATCH, S_ENC), 0, VOCAB)
    decoder_input_ids = jax.random.randint(ks[15], (BATCH, S_DEC), 0, VOCAB)
    encoder_attention_mask = jnp.ones((BATCH, S_ENC), jnp.float32)
    decoder_attention_mask = jnp.ones((BATCH, S_DEC), jnp.float32)

    # Embedding table for the BART stand-in (the gather is fused into the kernel).
    embed_table = w(ks[16], (VOCAB, EMBED_DIM), scale=1.0)

    start_logits, end_logits, decoder_out = jax.block_until_ready(
        onestop_qamaker_pallas(encoder_input_ids, encoder_attention_mask,
                               decoder_input_ids, decoder_attention_mask,
                               embed_table, params))

    # Reference: same stand-in computed with a plain gather, then pure-JAX head.
    # NOTE: the original PyTorch module does not pass a key_padding_mask to the
    # MultiheadAttention, so the attention scores are intentionally unmasked here.
    enc_h = embed_table[encoder_input_ids] * encoder_attention_mask[..., None]   # (B, S, E)
    dec_h = embed_table[decoder_input_ids] * decoder_attention_mask[..., None]   # (B, T, E)
    ref_start, ref_end, ref_dec = onestop_qamaker_ref(enc_h, dec_h, params)

    assert start_logits.shape == (BATCH, S_ENC)
    assert end_logits.shape == (BATCH, S_ENC)
    assert decoder_out.shape == (BATCH, S_DEC, VOCAB)
    assert jnp.allclose(start_logits, ref_start, rtol=2e-3, atol=2e-3)
    assert jnp.allclose(end_logits, ref_end, rtol=2e-3, atol=2e-3)
    assert jnp.allclose(decoder_out, ref_dec, rtol=2e-3, atol=2e-3)

    print("KERNEL_OK")
</pallas_src>

<mosaic_0001>
module attributes {stable_mosaic.version = 11 : i64} {
  func.func @_qamaker_kernel(%arg0: memref<16x1xi32, #tpu.memory_space<vmem>>, %arg1: memref<16x1xi32, #tpu.memory_space<vmem>>, %arg2: memref<16x1xf32, #tpu.memory_space<vmem>>, %arg3: memref<16x1xf32, #tpu.memory_space<vmem>>, %arg4: memref<128x32xf32, #tpu.memory_space<vmem>>, %arg5: memref<32x128xf32, #tpu.memory_space<vmem>>, %arg6: memref<1x128xf32, #tpu.memory_space<vmem>>, %arg7: memref<32x128xf32, #tpu.memory_space<vmem>>, %arg8: memref<1x128xf32, #tpu.memory_space<vmem>>, %arg9: memref<32x32xf32, #tpu.memory_space<vmem>>, %arg10: memref<1x32xf32, #tpu.memory_space<vmem>>, %arg11: memref<32x32xf32, #tpu.memory_space<vmem>>, %arg12: memref<1x32xf32, #tpu.memory_space<vmem>>, %arg13: memref<2x16xf32, #tpu.memory_space<vmem>>, %arg14: memref<8x2xf32, #tpu.memory_space<vmem>>, %arg15: memref<2x8xf32, #tpu.memory_space<vmem>>, %arg16: memref<8x32xf32, #tpu.memory_space<vmem>>, %arg17: memref<8x16xf32, #tpu.memory_space<vmem>>, %arg18: memref<2x128xf32, #tpu.memory_space<vmem>>, %arg19: memref<16x128xf32, #tpu.memory_space<vmem>>) attributes {dimension_semantics = [], scalar_prefetch = 0 : i64, scratch_operands = 0 : i64, tpu.core_type = #tpu.core_type<tc>} {
    %0 = tpu.iota {dimensions = array<i32: 1>} : vector<16x128xi32>
    %c0 = arith.constant 0 : index
    %c0_0 = arith.constant 0 : index
    %1 = vector.load %arg0[%c0, %c0_0] : memref<16x1xi32, #tpu.memory_space<vmem>>, vector<16x1xi32>
    %2 = vector.broadcast %1 : vector<16x1xi32> to vector<16x128xi32>
    %3 = arith.cmpi eq, %0, %2 : vector<16x128xi32>
    %4 = arith.extui %3 : vector<16x128xi1> to vector<16x128xi32>
    %5 = arith.sitofp %4 : vector<16x128xi32> to vector<16x128xf32>
    %c0_1 = arith.constant 0 : index
    %c0_2 = arith.constant 0 : index
    %6 = vector.load %arg4[%c0_1, %c0_2] : memref<128x32xf32, #tpu.memory_space<vmem>>, vector<128x32xf32>
    %cst = arith.constant dense<0.000000e+00> : vector<16x32xf32>
    %7 = tpu.matmul %5, %6, %cst {dimension_numbers = #tpu.dot_dimension_numbers<[1], [0], [0], [1], [0, 0, 1, 1], [], []>, precision = #tpu.contract_precision<fp32>} : vector<16x128xf32>, vector<128x32xf32>, vector<16x32xf32> -> vector<16x32xf32>
    %c0_3 = arith.constant 0 : index
    %c0_4 = arith.constant 0 : index
    %8 = vector.load %arg2[%c0_3, %c0_4] : memref<16x1xf32, #tpu.memory_space<vmem>>, vector<16x1xf32>
    %9 = vector.broadcast %8 : vector<16x1xf32> to vector<16x32xf32>
    %10 = arith.mulf %7, %9 : vector<16x32xf32>
    %11 = tpu.iota {dimensions = array<i32: 1>} : vector<16x128xi32>
    %c0_5 = arith.constant 0 : index
    %c0_6 = arith.constant 0 : index
    %12 = vector.load %arg1[%c0_5, %c0_6] : memref<16x1xi32, #tpu.memory_space<vmem>>, vector<16x1xi32>
    %13 = vector.broadcast %12 : vector<16x1xi32> to vector<16x128xi32>
    %14 = arith.cmpi eq, %11, %13 : vector<16x128xi32>
    %15 = arith.extui %14 : vector<16x128xi1> to vector<16x128xi32>
    %16 = arith.sitofp %15 : vector<16x128xi32> to vector<16x128xf32>
    %c0_7 = arith.constant 0 : index
    %c0_8 = arith.constant 0 : index
    %17 = vector.load %arg4[%c0_7, %c0_8] : memref<128x32xf32, #tpu.memory_space<vmem>>, vector<128x32xf32>
    %cst_9 = arith.constant dense<0.000000e+00> : vector<16x32xf32>
    %18 = tpu.matmul %16, %17, %cst_9 {dimension_numbers = #tpu.dot_dimension_numbers<[1], [0], [0], [1], [0, 0, 1, 1], [], []>, precision = #tpu.contract_precision<fp32>} : vector<16x128xf32>, vector<128x32xf32>, vector<16x32xf32> -> vector<16x32xf32>
    %c0_10 = arith.constant 0 : index
    %c0_11 = arith.constant 0 : index
    %19 = vector.load %arg3[%c0_10, %c0_11] : memref<16x1xf32, #tpu.memory_space<vmem>>, vector<16x1xf32>
    %20 = vector.broadcast %19 : vector<16x1xf32> to vector<16x32xf32>
    %21 = arith.mulf %18, %20 : vector<16x32xf32>
    %c0_12 = arith.constant 0 : index
    %c0_13 = arith.constant 0 : index
    %22 = vector.load %arg7[%c0_12, %c0_13] : memref<32x128xf32, #tpu.memory_space<vmem>>, vector<32x128xf32>
    %cst_14 = arith.constant dense<0.000000e+00> : vector<16x128xf32>
    %23 = tpu.matmul %21, %22, %cst_14 {dimension_numbers = #tpu.dot_dimension_numbers<[1], [0], [0], [1], [0, 0, 1, 1], [], []>, precision = #tpu.contract_precision<fp32>} : vector<16x32xf32>, vector<32x128xf32>, vector<16x128xf32> -> vector<16x128xf32>
    %c0_15 = arith.constant 0 : index
    %c0_16 = arith.constant 0 : index
    %24 = vector.load %arg8[%c0_15, %c0_16] : memref<1x128xf32, #tpu.memory_space<vmem>>, vector<1x128xf32>
    %25 = vector.broadcast %24 : vector<1x128xf32> to vector<16x128xf32>
    %26 = arith.addf %23, %25 : vector<16x128xf32>
    %c0_17 = arith.constant 0 : index
    %c0_18 = arith.constant 0 : index
    %27 = vector.load %arg19[%c0_17, %c0_18] : memref<16x128xf32, #tpu.memory_space<vmem>>, vector<16x128xf32>
    tpu.vector_store %arg19[%c0_17, %c0_18], %26 {strides = array<i32>} : memref<16x128xf32, #tpu.memory_space<vmem>>, vector<16x128xf32>,
    %c0_19 = arith.constant 0 : index
    %c0_20 = arith.constant 0 : index
    %28 = vector.load %arg5[%c0_19, %c0_20] : memref<32x128xf32, #tpu.memory_space<vmem>>, vector<32x128xf32>
    %cst_21 = arith.constant dense<0.000000e+00> : vector<16x128xf32>
    %29 = tpu.matmul %10, %28, %cst_21 {dimension_numbers = #tpu.dot_dimension_numbers<[1], [0], [0], [1], [0, 0, 1, 1], [], []>, precision = #tpu.contract_precision<fp32>} : vector<16x32xf32>, vector<32x128xf32>, vector<16x128xf32> -> vector<16x128xf32>
    %c0_22 = arith.constant 0 : index
    %c0_23 = arith.constant 0 : index
    %30 = vector.load %arg6[%c0_22, %c0_23] : memref<1x128xf32, #tpu.memory_space<vmem>>, vector<1x128xf32>
    %31 = vector.broadcast %30 : vector<1x128xf32> to vector<16x128xf32>
    %32 = arith.addf %29, %31 : vector<16x128xf32>
    %33 = vector.extract_strided_slice %32 {offsets = [0, 0], sizes = [16, 32], strides = [1, 1]} : vector<16x128xf32> to vector<16x32xf32>
    %34 = vector.extract_strided_slice %32 {offsets = [0, 32], sizes = [16, 32], strides = [1, 1]} : vector<16x128xf32> to vector<16x32xf32>
    %35 = vector.extract_strided_slice %32 {offsets = [0, 64], sizes = [16, 32], strides = [1, 1]} : vector<16x128xf32> to vector<16x32xf32>
    %36 = vector.extract_strided_slice %32 {offsets = [0, 96], sizes = [16, 32], strides = [1, 1]} : vector<16x128xf32> to vector<16x32xf32>
    %c0_24 = arith.constant 0 : index
    %c0_25 = arith.constant 0 : index
    %37 = vector.load %arg13[%c0_24, %c0_25] : memref<2x16xf32, #tpu.memory_space<vmem>>, vector<2x16xf32>
    %cst_26 = arith.constant dense<0.000000e+00> : vector<2x32xf32>
    %38 = tpu.matmul %37, %21, %cst_26 {dimension_numbers = #tpu.dot_dimension_numbers<[1], [0], [0], [1], [0, 0, 1, 1], [], []>, precision = #tpu.contract_precision<fp32>} : vector<2x16xf32>, vector<16x32xf32>, vector<2x32xf32> -> vector<2x32xf32>
    %c0_27 = arith.constant 0 : index
    %c0_28 = arith.constant 0 : index
    %39 = vector.load %arg9[%c0_27, %c0_28] : memref<32x32xf32, #tpu.memory_space<vmem>>, vector<32x32xf32>
    %cst_29 = arith.constant dense<0.000000e+00> : vector<2x32xf32>
    %40 = tpu.matmul %38, %39, %cst_29 {dimension_numbers = #tpu.dot_dimension_numbers<[1], [0], [0], [1], [0, 0, 1, 1], [], []>, precision = #tpu.contract_precision<fp32>} : vector<2x32xf32>, vector<32x32xf32>, vector<2x32xf32> -> vector<2x32xf32>
    %c0_30 = arith.constant 0 : index
    %c0_31 = arith.constant 0 : index
    %41 = vector.load %arg10[%c0_30, %c0_31] : memref<1x32xf32, #tpu.memory_space<vmem>>, vector<1x32xf32>
    %42 = vector.broadcast %41 : vector<1x32xf32> to vector<2x32xf32>
    %43 = arith.addf %40, %42 : vector<2x32xf32>
    %c0_32 = arith.constant 0 : index
    %c0_33 = arith.constant 0 : index
    %44 = vector.load %arg14[%c0_32, %c0_33] : memref<8x2xf32, #tpu.memory_space<vmem>>, vector<8x2xf32>
    %cst_34 = arith.constant dense<0.000000e+00> : vector<8x32xf32>
    %45 = tpu.matmul %44, %43, %cst_34 {dimension_numbers = #tpu.dot_dimension_numbers<[1], [0], [0], [1], [0, 0, 1, 1], [], []>, precision = #tpu.contract_precision<fp32>} : vector<8x2xf32>, vector<2x32xf32>, vector<8x32xf32> -> vector<8x32xf32>
    %c0_35 = arith.constant 0 : index
    %c0_36 = arith.constant 0 : index
    %46 = vector.load %arg16[%c0_35, %c0_36] : memref<8x32xf32, #tpu.memory_space<vmem>>, vector<8x32xf32>
    %cst_37 = arith.constant 0.353553385 : f32
    %47 = vector.broadcast %cst_37 : f32 to vector<8x32xf32>
    %48 = arith.mulf %45, %47 : vector<8x32xf32>
    %49 = arith.mulf %46, %48 : vector<8x32xf32>
    %cst_38 = arith.constant dense<0.000000e+00> : vector<8x16xf32>
    %50 = tpu.matmul %49, %33, %cst_38 {dimension_numbers = #tpu.dot_dimension_numbers<[1], [1], [0], [0], [0, 0, 1, 0], [], []>, precision = #tpu.contract_precision<fp32>} : vector<8x32xf32>, vector<16x32xf32>, vector<8x16xf32> -> vector<8x16xf32>
    %c0_39 = arith.constant 0 : index
    %c0_40 = arith.constant 0 : index
    %51 = vector.load %arg17[%c0_39, %c0_40] : memref<8x16xf32, #tpu.memory_space<vmem>>, vector<8x16xf32>
    %52 = arith.addf %50, %51 : vector<8x16xf32>
    %cst_41 = arith.constant dense<0xFF800000> : vector<8xf32>
    %53 = vector.multi_reduction <maximumf>, %52, %cst_41 [1] : vector<8x16xf32> to vector<8xf32>
    %54 = vector.shape_cast %53 : vector<8xf32> to vector<8x1xf32>
    %55 = vector.broadcast %54 : vector<8x1xf32> to vector<8x16xf32>
    %56 = arith.subf %52, %55 : vector<8x16xf32>
    %57 = math.exp %56 : vector<8x16xf32>
    %cst_42 = arith.constant dense<0.000000e+00> : vector<8xf32>
    %58 = vector.multi_reduction <add>, %57, %cst_42 [1] : vector<8x16xf32> to vector<8xf32>
    %59 = vector.shape_cast %58 : vector<8xf32> to vector<8x1xf32>
    %60 = vector.broadcast %59 : vector<8x1xf32> to vector<8x16xf32>
    %61 = arith.divf %57, %60 : vector<8x16xf32>
    %cst_43 = arith.constant dense<0.000000e+00> : vector<8x32xf32>
    %62 = tpu.matmul %61, %34, %cst_43 {dimension_numbers = #tpu.dot_dimension_numbers<[1], [0], [0], [1], [0, 0, 1, 1], [], []>, precision = #tpu.contract_precision<fp32>} : vector<8x16xf32>, vector<16x32xf32>, vector<8x32xf32> -> vector<8x32xf32>
    %c0_44 = arith.constant 0 : index
    %c0_45 = arith.constant 0 : index
    %63 = vector.load %arg15[%c0_44, %c0_45] : memref<2x8xf32, #tpu.memory_space<vmem>>, vector<2x8xf32>
    %c0_46 = arith.constant 0 : index
    %c0_47 = arith.constant 0 : index
    %64 = vector.load %arg16[%c0_46, %c0_47] : memref<8x32xf32, #tpu.memory_space<vmem>>, vector<8x32xf32>
    %65 = arith.mulf %62, %64 : vector<8x32xf32>
    %cst_48 = arith.constant dense<0.000000e+00> : vector<2x32xf32>
    %66 = tpu.matmul %63, %65, %cst_48 {dimension_numbers = #tpu.dot_dimension_numbers<[1], [0], [0], [1], [0, 0, 1, 1], [], []>, precision = #tpu.contract_precision<fp32>} : vector<2x8xf32>, vector<8x32xf32>, vector<2x32xf32> -> vector<2x32xf32>
    %c0_49 = arith.constant 0 : index
    %c0_50 = arith.constant 0 : index
    %67 = vector.load %arg11[%c0_49, %c0_50] : memref<32x32xf32, #tpu.memory_space<vmem>>, vector<32x32xf32>
    %cst_51 = arith.constant dense<0.000000e+00> : vector<2x32xf32>
    %68 = tpu.matmul %66, %67, %cst_51 {dimension_numbers = #tpu.dot_dimension_numbers<[1], [0], [0], [1], [0, 0, 1, 1], [], []>, precision = #tpu.contract_precision<fp32>} : vector<2x32xf32>, vector<32x32xf32>, vector<2x32xf32> -> vector<2x32xf32>
    %c0_52 = arith.constant 0 : index
    %c0_53 = arith.constant 0 : index
    %69 = vector.load %arg12[%c0_52, %c0_53] : memref<1x32xf32, #tpu.memory_space<vmem>>, vector<1x32xf32>
    %70 = vector.broadcast %69 : vector<1x32xf32> to vector<2x32xf32>
    %71 = arith.addf %68, %70 : vector<2x32xf32>
    %cst_54 = arith.constant dense<0.000000e+00> : vector<2x16xf32>
    %72 = tpu.matmul %71, %35, %cst_54 {dimension_numbers = #tpu.dot_dimension_numbers<[1], [1], [0], [0], [0, 0, 1, 0], [], []>, precision = #tpu.contract_precision<fp32>} : vector<2x32xf32>, vector<16x32xf32>, vector<2x16xf32> -> vector<2x16xf32>
    %cst_55 = arith.constant dense<0.000000e+00> : vector<2x16xf32>
    %73 = tpu.matmul %71, %36, %cst_55 {dimension_numbers = #tpu.dot_dimension_numbers<[1], [1], [0], [0], [0, 0, 1, 0], [], []>, precision = #tpu.contract_precision<fp32>} : vector<2x32xf32>, vector<16x32xf32>, vector<2x16xf32> -> vector<2x16xf32>
    %cst_56 = arith.constant 0.000000e+00 : f32
    %74 = vector.broadcast %cst_56 : f32 to vector<2x96xf32>
    %75 = tpu.concatenate %72, %73, %74 in 1 : vector<2x16xf32>, vector<2x16xf32>, vector<2x96xf32> -> vector<2x128xf32>
    %c0_57 = arith.constant 0 : index
    %c0_58 = arith.constant 0 : index
    %76 = vector.load %arg18[%c0_57, %c0_58] : memref<2x128xf32, #tpu.memory_space<vmem>>, vector<2x128xf32>
    tpu.vector_store %arg18[%c0_57, %c0_58], %75 {strides = array<i32>} : memref<2x128xf32, #tpu.memory_space<vmem>>, vector<2x128xf32>,
    return
  }
}

</mosaic_0001>

<bundles_post_ra>
// kernel: tpu_custom_call.1
= control target key start
LH: loop header
LB: loop body
LE: loop exit
PB: predicated region body
PF: predicated region fallthrough
CT: control target
= control target key end

     0   :  { %s10426_s0 = inlined_call_operand.vmem [shape: s32[16,1], index: 0, kind: input, shape index: {}]   ;;  %s10427_s1 = inlined_call_operand.vmem [shape: s32[16,1], index: 1, kind: input, shape index: {}]   ;;  %s10428_s2 = inlined_call_operand.vmem [shape: f32[16,1], index: 2, kind: input, shape index: {}]   ;;  %s10429_s3 = inlined_call_operand.vmem [shape: f32[16,1], index: 3, kind: input, shape index: {}]   ;;  %s10430_s4 = inlined_call_operand.vmem [shape: f32[128,32], index: 4, kind: input, shape index: {}]   ;;  %s10431_s5 = inlined_call_operand.vmem [shape: f32[32,128], index: 5, kind: input, shape index: {}]   ;;  %s10432_s6 = inlined_call_operand.vmem [shape: f32[1,128], index: 6, kind: input, shape index: {}]   ;;  %s10433_s7 = inlined_call_operand.vmem [shape: f32[32,128], index: 7, kind: input, shape index: {}]   ;;  %s10434_s8 = inlined_call_operand.vmem [shape: f32[1,128], index: 8, kind: input, shape index: {}]   ;;  %s10435_s9 = inlined_call_operand.vmem [shape: f32[32,32], index: 9, kind: input, shape index: {}]   ;;  %s10436_s10 = inlined_call_operand.vmem [shape: f32[1,32], index: 10, kind: input, shape index: {}]   ;;  %s10437_s11 = inlined_call_operand.vmem [shape: f32[32,32], index: 11, kind: input, shape index: {}]   ;;  %s10438_s12 = inlined_call_operand.vmem [shape: f32[1,32], index: 12, kind: input, shape index: {}]   ;;  %s10439_s13 = inlined_call_operand.vmem [shape: f32[2,16], index: 13, kind: input, shape index: {}]   ;;  %s10440_s14 = inlined_call_operand.vmem [shape: f32[8,2], index: 14, kind: input, shape index: {}]   ;;  %s10441_s15 = inlined_call_operand.vmem [shape: f32[2,8], index: 15, kind: input, shape index: {}]   ;;  %s10442_s16 = inlined_call_operand.vmem [shape: f32[8,32], index: 16, kind: input, shape index: {}]   ;;  %s10443_s17 = inlined_call_operand.vmem [shape: f32[8,16], index: 17, kind: input, shape index: {}]   ;;  %s10444_s18 = inlined_call_operand.hbm [shape: f32[2,128], index: 18, kind: output, shape index: {0}]   ;;  %s10445_s19 = inlined_call_operand.hbm [shape: f32[16,128], index: 19, kind: output, shape index: {1}]  }
   0x1   :  { %10453 = sst [smem:[#allocation8_spill]] %s10426_s0 }
   0x2   :  { %10454 = sst [smem:[#allocation9_spill]] %s10427_s1 }
   0x3   :  { %10455 = sst [smem:[#allocation10_spill]] %s10428_s2 }
   0x4   :  { %10456 = sst [smem:[#allocation11_spill]] %s10429_s3 }
   0x5   :  { %25 = vsyncpa [#allocation3], 0  ;;  %s10457_s20 = sld [smem:[#allocation8_spill]]  ;;  %v9174_v1 = vmov 0   ;;  %s10458_s22 = sld [smem:[#allocation9_spill]]  ;;  %v79_v5 = vld [vmem:[%s10430_s4] sm:$0xff] }
   0x6   :  { %9120 = vset.pattern.permute.xlu0 %v9174_v1  ;;  %9121 = vset.pattern.permute.xlu1 %v9174_v1  ;;  %v80_v6 = vld [vmem:[%s10430_s4 + $0x8] sm:$0xff]  ;;  %v96_v7 = vand.u32 4294901760, %v79_v5  ;;  %v81_v8 = vld [vmem:[%s10430_s4 + $0x10] sm:$0xff]  ;;  %v82_v9 = vld [vmem:[%s10430_s4 + $0x18] sm:$0xff]  ;;  %s10459_s28 = sld [smem:[#allocation11_spill]] }
   0x7   :  { %v99_v10 = vand.u32 4294901760, %v80_v6  ;;  %v102_v11 = vand.u32 4294901760, %v81_v8  ;;  %v105_v12 = vand.u32 4294901760, %v82_v9  ;;  %v83_v13 = vld [vmem:[%s10430_s4 + $0x20] sm:$0xff]  ;;  %v84_v14 = vld [vmem:[%s10430_s4 + $0x28] sm:$0xff]  ;;  %v85_v15 = vld [vmem:[%s10430_s4 + $0x30] sm:$0xff] }
   0x8   :  { %v9320_v16 = vsub.f32 %v79_v5, %v96_v7  ;;  %v108_v17 = vand.u32 4294901760, %v83_v13  ;;  %v111_v18 = vand.u32 4294901760, %v84_v14  ;;  %v86_v19 = vld [vmem:[%s10430_s4 + $0x38] sm:$0xff]  ;;  %v114_v20 = vand.u32 4294901760, %v85_v15 }
   0x9   :  { %v9325_v21 = vpack.c.bf16 %v99_v10, %v96_v7  ;;  %v9327_v22 = vsub.f32 %v80_v6, %v99_v10  ;;  %v9329_v23 = vpack.c.bf16 %v105_v12, %v102_v11  ;;  %v117_v24 = vand.u32 4294901760, %v86_v19 }
   0xa   :  { %v199_v27 = vand.u32 4294901760, %v9320_v16  ;;  %v9338_v28 = vsub.f32 %v81_v8, %v102_v11  ;;  %v9340_v29 = vsub.f32 %v82_v9, %v105_v12  ;;  %v9342_v30 = vpack.c.bf16 %v111_v18, %v108_v17 }
   0xb   :  { %v65_v0 = vld [vmem:[%s10457_s20] sm:$0xff]  ;;  %v66_v3 = vld [vmem:[%s10457_s20 + $0x8] sm:$0xff]  ;;  %v206_v31 = vand.u32 4294901760, %v9327_v22  ;;  %v9345_v32 = vsub.f32 %v83_v13, %v108_v17  ;;  %v9347_v33 = vsub.f32 %v84_v14, %v111_v18  ;;  %8329 = vmatprep.subr.bf16.mxu1 %v9325_v21  ;;  %v9350_v34 = vpack.c.bf16 %v117_v24, %v114_v20 }
   0xc   :  { %v793_v2 = vld [vmem:[%s10458_s22] sm:$0xff]  ;;  %68 = vperm.xlu0 %9120, %v65_v0   ;;  %v794_v4 = vld [vmem:[%s10458_s22 + $0x8] sm:$0xff] }
   0xd   :  { %796 = vperm.xlu1 %9121, %v793_v2   ;;  %v1491_v25 = vld [vmem:[%s10459_s28] sm:$0xff]  ;;  %v1492_v26 = vld [vmem:[%s10459_s28 + $0x8] sm:$0xff] }
  0x10   :  { %71 = vperm.xlu0 %9120, %v66_v3  }
  0x11   :  { %799 = vperm.xlu1 %9121, %v794_v4  }
  0x12   :  { %26 = vsyncpa [#allocation5], 0  ;;  %v200_v35 = vsub.f32 %v9320_v16, %v199_v27  ;;  %v213_v36 = vand.u32 4294901760, %v9338_v28  ;;  %v220_v37 = vand.u32 4294901760, %v9340_v29  ;;  %8331 = vmatpush3.bf16.msra.mxu1 %v9325_v21  ;;  %v9358_v38 = vsub.f32 %v85_v15, %v114_v20  ;;  %v87_v43 = vld [vmem:[%s10430_s4 + $0x40] sm:$0xff]  ;;  %s10460_s22 = sld [smem:[#allocation10_spill]] }
  0x13   :  { %v207_v39 = vsub.f32 %v9327_v22, %v206_v31  ;;  %v227_v40 = vand.u32 4294901760, %v9345_v32  ;;  %v234_v41 = vand.u32 4294901760, %v9347_v33  ;;  %v9365_v42 = vsub.f32 %v86_v19, %v117_v24  ;;  %8333 = vmatprep.subr.bf16.mxu1 %v9329_v23  ;;  %v88_v54 = vld [vmem:[%s10430_s4 + $0x48] sm:$0xff]  ;;  %v89_v59 = vld [vmem:[%s10430_s4 + $0x50] sm:$0xff]  ;;  %v90_v60 = vld [vmem:[%s10430_s4 + $0x58] sm:$0xff]  ;;  %s9179_s21 = smov 96  }
  0x14   :  { %1495 = vperm.xlu0 %9120, %v1491_v25   ;;  %v201_v46 = vand.u32 4294901760, %v200_v35  ;;  %v214_v47 = vsub.f32 %v9338_v28, %v213_v36  ;;  %v221_v48 = vsub.f32 %v9340_v29, %v220_v37  ;;  %v241_v49 = vand.u32 4294901760, %v9358_v38  ;;  %v91_v1 = vld [vmem:[%s10430_s4 + $0x60] sm:$0xff]  ;;  %v92_v9 = vld [vmem:[%s10430_s4 + $0x68] sm:$0xff]  ;;  %v93_v14 = vld [vmem:[%s10430_s4 + $0x70] sm:$0xff]  ;;  %s9180_s1 = smov 32  }
  0x15   :  { %1500 = vperm.xlu1 %9121, %v1492_v26   ;;  %v208_v50 = vand.u32 4294901760, %v207_v39  ;;  %v228_v51 = vsub.f32 %v9345_v32, %v227_v40  ;;  %v235_v52 = vsub.f32 %v9347_v33, %v234_v41  ;;  %v248_v53 = vand.u32 4294901760, %v9365_v42  ;;  %v94_v15 = vld [vmem:[%s10430_s4 + $0x78] sm:$0xff] }
  0x16   :  { %v215_v55 = vand.u32 4294901760, %v214_v47  ;;  %v222_v56 = vand.u32 4294901760, %v221_v48  ;;  %v242_v57 = vsub.f32 %v9358_v38, %v241_v49  ;;  %8335 = vmatpush3.bf16.msra.mxu1 %v9329_v23  ;;  %v120_v58 = vand.u32 4294901760, %v87_v43 }
  0x17   :  { %v9404_v61 = vpack.c.bf16 %v208_v50, %v201_v46  ;;  %v229_v62 = vand.u32 4294901760, %v228_v51  ;;  %v236_v63 = vand.u32 4294901760, %v235_v52  ;;  %v249_v0 = vsub.f32 %v9365_v42, %v248_v53  ;;  %8337 = vmatprep.subr.bf16.mxu1 %v9342_v30 }
  0x18   :  { %v779_v44 = vld [vmem:[%s10460_s22] sm:$0xff]  ;;  %v780_v45 = vld [vmem:[%s10460_s22 + $0x8] sm:$0xff]  ;;  %v9412_v2 = vpack.c.bf16 %v222_v56, %v215_v55  ;;  %v243_v3 = vand.u32 4294901760, %v242_v57  ;;  %v123_v4 = vand.u32 4294901760, %v88_v54  ;;  %v9414_v5 = vsub.f32 %v87_v43, %v120_v58  ;;  %s9181_s22 = smov 64  }
  0x19   :  { %783 = vperm.xlu0 %9120, %v779_v44   ;;  %788 = vperm.xlu1 %9121, %v780_v45   ;;  %v250_v6 = vand.u32 4294901760, %v249_v0  ;;  %v126_v7 = vand.u32 4294901760, %v89_v59  ;;  %v129_v8 = vand.u32 4294901760, %v90_v60  ;;  %v9422_v10 = vpack.c.bf16 %v236_v63, %v229_v62 }
  0x1a   :  { %8361 = vmatprep.subr.bf16.mxu0 %v9404_v61  ;;  %v255_v11 = vand.u32 4294901760, %v9414_v5  ;;  %v9425_v12 = vsub.f32 %v88_v54, %v123_v4  ;;  %8339 = vmatpush3.bf16.msra.mxu1 %v9342_v30  ;;  %v132_v13 = vand.u32 4294901760, %v91_v1  ;;  %v9437_v18 = vpack.c.bf16 %v123_v4, %v120_v58 }
  0x1b   :  { %8363 = vmatpush3.bf16.msra.mxu0 %v9404_v61  ;;  %v9435_v17 = vpack.c.bf16 %v250_v6, %v243_v3  ;;  %v9439_v19 = vsub.f32 %v89_v59, %v126_v7  ;;  %v9441_v20 = vsub.f32 %v90_v60, %v129_v8  ;;  %8341 = vmatprep.subr.bf16.mxu1 %v9350_v34  ;;  %v135_v26 = vand.u32 4294901760, %v92_v9 }
  0x1c   :  { %8365 = vmatprep.subr.bf16.mxu0 %v9412_v2  ;;  %v256_v24 = vsub.f32 %v9414_v5, %v255_v11  ;;  %v262_v25 = vand.u32 4294901760, %v9425_v12  ;;  %v9448_v35 = vsub.f32 %v91_v1, %v132_v13  ;;  %v138_v44 = vand.u32 4294901760, %v93_v14 }
  0x1d   :  { %v269_v39 = vand.u32 4294901760, %v9439_v19  ;;  %v276_v43 = vand.u32 4294901760, %v9441_v20  ;;  %v141_v45 = vand.u32 4294901760, %v94_v15  ;;  %v9456_v48 = vpack.c.bf16 %v129_v8, %v126_v7 }
  0x1e   :  { %v257_v46 = vand.u32 4294901760, %v256_v24  ;;  %v263_v47 = vsub.f32 %v9425_v12, %v262_v25  ;;  %8343 = vmatpush3.bf16.msra.mxu1 %v9350_v34  ;;  %v283_v50 = vand.u32 4294901760, %v9448_v35  ;;  %v9467_v54 = vsub.f32 %v92_v9, %v135_v26 }
  0x1f   :  { %8367 = vmatpush3.bf16.msra.mxu0 %v9412_v2  ;;  %v270_v51 = vsub.f32 %v9439_v19, %v269_v39  ;;  %v277_v52 = vsub.f32 %v9441_v20, %v276_v43  ;;  %8345 = vmatprep.subr.bf16.mxu1 %v9437_v18  ;;  %v9470_v56 = vsub.f32 %v93_v14, %v138_v44  ;;  %vm1516_vm4 = vcmask 261120  }
  0x20   :  { %8369 = vmatprep.subr.bf16.mxu0 %v9422_v10  ;;  %v264_v55 = vand.u32 4294901760, %v263_v47  ;;  %v9472_v57 = vpack.c.bf16 %v135_v26, %v132_v13  ;;  %v10452_v58 = vand.u32 4294901760, %v9467_v54  ;;  %v9475_v59 = vsub.f32 %v94_v15, %v141_v45 }
  0x21   :  { %v271_v62 = vand.u32 4294901760, %v270_v51  ;;  %v278_v63 = vand.u32 4294901760, %v277_v52  ;;  %v284_v0 = vsub.f32 %v9448_v35, %v283_v50  ;;  %v10451_v3 = vand.u32 4294901760, %v9470_v56 }
  0x22   :  { %v9478_v60 = vpack.c.bf16 %v264_v55, %v257_v46  ;;  %8347 = vmatpush3.bf16.msra.mxu1 %v9437_v18  ;;  %v291_v1 = vsub.f32 %v9467_v54, %v10452_v58  ;;  %v10450_v4 = vand.u32 4294901760, %v9475_v59  ;;  %v9493_v6 = vpack.c.bf16 %v9340_v29, %v9338_v28 }
  0x23   :  { %8371 = vmatpush3.bf16.msra.mxu0 %v9422_v10  ;;  %8349 = vmatprep.subr.bf16.mxu1 %v9456_v48  ;;  %v9497_v7 = vpack.c.bf16 %v9347_v33, %v9345_v32  ;;  %v9501_v8 = vpack.c.bf16 %v9365_v42, %v9358_v38  ;;  %v9505_v9 = vpack.c.bf16 %v9425_v12, %v9414_v5  ;;  %v285_v14 = vand.u32 4294901760, %v284_v0 }
  0x24   :  { %8373 = vmatprep.subr.bf16.mxu0 %v9435_v17  ;;  %v9509_v13 = vpack.c.bf16 %v9441_v20, %v9439_v19  ;;  %v9512_v15 = vpack.c.bf16 %v141_v45, %v138_v44  ;;  %v9517_v24 = vpack.c.bf16 %v9467_v54, %v9448_v35  ;;  %v9520_v26 = vpack.c.bf16 %v278_v63, %v271_v62 }
  0x25   :  { %v292_v46 = vand.u32 4294901760, %v291_v1  ;;  %v298_v47 = vsub.f32 %v9470_v56, %v10451_v3  ;;  %v305_v44 = vsub.f32 %v9475_v59, %v10450_v4  ;;  %v9533_v45 = vpack.c.bf16 %v9475_v59, %v9470_v56 }
  0x26   :  { %8351 = vmatpush3.bf16.msra.mxu1 %v9456_v48  ;;  %v9549_v63 = vpack.c.bf16 %v9327_v22, %v9320_v16  ;;  %v9557_v0 = vpack.c.bf16 %v206_v31, %v199_v27  ;;  %v9563_v1 = vpack.c.bf16 %v220_v37, %v213_v36  ;;  %v9175_v16 = vmov 1.0  }
  0x27   :  { %8375 = vmatpush3.bf16.msra.mxu0 %v9435_v17  ;;  %8353 = vmatprep.subr.bf16.mxu1 %v9472_v57  ;;  %v9536_v51 = vpack.c.bf16 %v292_v46, %v285_v14  ;;  %v299_v52 = vand.u32 4294901760, %v298_v47  ;;  %v306_v55 = vand.u32 4294901760, %v305_v44  ;;  %v63_v14 = vlaneseq }
  0x28   :  { %8377 = vmatprep.subr.bf16.mxu0 %v9478_v60  ;;  %v9176_v22 = vmov 0.0   ;;  %v9727_v32 = vpack.c.bf16 %v262_v25, %v255_v11  ;;  %v9738_v33 = vpack.c.bf16 %v276_v43, %v269_v39  ;;  %v10461_v38 = vand.u32 4294901760, %v9467_v54  ;;  %v2056_v11 = vld [vmem:[%s10431_s5 + $0x18] sm:$0xff] }
  0x29   :  { %v9542_v62 = vpack.c.bf16 %v306_v55, %v299_v52  ;;  %v9565_v46 = vand.u32 127, %v63_v14  ;;  %v10463_v42 = vand.u32 4294901760, %v9475_v59  ;;  %v2080_v19 = vand.u32 4294901760, %v2056_v11 }
  0x2a   :  { %8355 = vmatpush3.bf16.msra.mxu1 %v9472_v57  ;;  %vm9178_vm5 = vmmov 0   ;;  %vm2599_vm6 = vcmask 130048   ;;  %vm3562_vm7 = vcmask 15360   ;;  %vm3566_vm8 = vcmask 1041408  }
  0x2b   :  { %8379 = vmatpush3.bf16.msra.mxu0 %v9478_v60  ;;  %8357 = vmatprep.subr.bf16.mxu1 %v9512_v15  ;;  %v2182_v39 = vsub.f32 %v2056_v11, %v2080_v19  ;;  %vm4969_vm9 = vcmask 64512  }
  0x2c   :  { %8381 = vmatprep.subr.bf16.mxu0 %v9520_v26 }
  0x2d   :  { %v2183_v54 = vand.u32 4294901760, %v2182_v39 }
  0x2e   :  { %8359 = vmatpush3.bf16.msra.mxu1 %v9512_v15 }
  0x2f   :  { %8383 = vmatpush3.bf16.msra.mxu0 %v9520_v26  ;;  %8521 = vmatprep.subr.bf16.mxu1 %v9325_v21  ;;  %v2184_v59 = vsub.f32 %v2182_v39, %v2183_v54 }
  0x30   :  { %8385 = vmatprep.subr.bf16.mxu0 %v9536_v51 }
  0x33   :  { %8387 = vmatpush3.bf16.msra.mxu0 %v9536_v51 }
  0x34   :  { %8389 = vmatprep.subr.bf16.mxu0 %v9542_v62 }
  0x37   :  { %8391 = vmatpush3.bf16.msra.mxu0 %v9542_v62 }
  0x38   :  { %8393 = vmatprep.subr.bf16.mxu0 %v9549_v63 }
  0x8b   :  { %v9567_v47 = vpop.permute.xlu0 %68 }
  0x8c   :  { %v9569_v44 = vpop.permute.xlu1 %796  ;;  %vm73_vm0 = vcmp.eq.s32.totalorder %v9565_v46, %v9567_v47 }
  0x8d   :  { %vm801_vm1 = vcmp.eq.s32.totalorder %v9565_v46, %v9569_v44  ;;  %7441 = vmatprep.mubr.msk.f32.mxu0 %vm73_vm0, %v9175_v16  ;;  %v6892_v27 = vsel %vm73_vm0, 1.0, %v9176_v22  ;;  %v1507_v44 = vld [vmem:[%s10433_s7 + $0x10] sm:$0xff] }
  0x8e   :  { %v6900_v28 = vsel %vm801_vm1, 1.0, %v9176_v22  ;;  %v177_v29 = vsub.f32 %v6892_v27, %v6892_v27 }
  0x8f   :  { %v9587_v31 = vsub.f32 %v6900_v28, %v6900_v28  ;;  %v9589_v36 = vpop.permute.xlu0 %71 }
  0x90   :  { %vm74_vm2 = vcmp.eq.s32.totalorder %v9565_v46, %v9589_v36  ;;  %v178_v37 = vand.u32 4294901760, %v177_v29 }
  0x91   :  { %v890_v52 = vand.u32 4294901760, %v9587_v31  ;;  %v6893_v55 = vsel %vm74_vm2, 1.0, %v9176_v22  ;;  %7442 = vmatmul.mubr.msk.f32.vlgmr.msra.gmra.mrb[0].mxu0 %vm74_vm2, %v9175_v16 }
  0x92   :  { %v9602_v14 = vsub.f32 %v6893_v55, %v6893_v55  ;;  %8395 = vmatpush3.bf16.msra.mxu0 %v9549_v63  ;;  %7476 = vmatprep.mubr.f32.mxu0 %v177_v29  ;;  %v179_v27 = vsub.f32 %v177_v29, %v178_v37 }
  0x93   :  { %8397 = vmatprep.subr.bf16.mxu0 %v9493_v6  ;;  %v891_v3 = vsub.f32 %v9587_v31, %v890_v52 }
  0x94   :  { %v180_v28 = vand.u32 4294901760, %v179_v27  ;;  %v188_v4 = vand.u32 4294901760, %v9602_v14 }
  0x95   :  { %v892_v29 = vand.u32 4294901760, %v891_v3 }
  0x96   :  { %8399 = vmatpush3.bf16.msra.mxu0 %v9493_v6  ;;  %7406 = vmatprep.mubr.f32.mxu1 %v180_v28  ;;  %v189_v55 = vsub.f32 %v9602_v14, %v188_v4 }
  0x97   :  { %8401 = vmatprep.subr.bf16.mxu0 %v9497_v7 }
  0x98   :  { %v190_v58 = vand.u32 4294901760, %v189_v55 }
  0x9a   :  { %8403 = vmatpush3.bf16.msra.mxu0 %v9497_v7  ;;  %7407 = vmatmul.mubr.f32.vlgmr.msra.gmra.mrb[0].mxu1 %v190_v58  ;;  %v9627_v58 = vpop.permute.xlu1 %799 }
  0x9b   :  { %8523 = vmatpush3.bf16.msra.mxu1 %v9325_v21  ;;  %8405 = vmatprep.subr.bf16.mxu0 %v9501_v8  ;;  %vm802_vm3 = vcmp.eq.s32.totalorder %v9565_v46, %v9627_v58 }
  0x9c   :  { %8525 = vmatprep.subr.bf16.mxu1 %v9329_v23  ;;  %7616 = vmatprep.mubr.f32.mxu1 %v892_v29  ;;  %v6901_v3 = vsel %vm802_vm3, 1.0, %v9176_v22 }
  0x9d   :  { %v9642_v27 = vsub.f32 %v6901_v3, %v6901_v3 }
  0x9e   :  { %8407 = vmatpush3.bf16.msra.mxu0 %v9501_v8 }
  0x9f   :  { %8527 = vmatpush3.bf16.msra.mxu1 %v9329_v23  ;;  %8409 = vmatprep.subr.bf16.mxu0 %v9505_v9  ;;  %v900_v28 = vand.u32 4294901760, %v9642_v27 }
  0xa0   :  { %8529 = vmatprep.subr.bf16.mxu1 %v9342_v30 }
  0xa1   :  { %v901_v55 = vsub.f32 %v9642_v27, %v900_v28 }
  0xa2   :  { %8411 = vmatpush3.bf16.msra.mxu0 %v9505_v9 }
  0xa3   :  { %8531 = vmatpush3.bf16.msra.mxu1 %v9342_v30  ;;  %8413 = vmatprep.subr.bf16.mxu0 %v9509_v13  ;;  %v902_v29 = vand.u32 4294901760, %v901_v55 }
  0xa4   :  { %8533 = vmatprep.subr.bf16.mxu1 %v9350_v34 }
  0xa6   :  { %8415 = vmatpush3.bf16.msra.mxu0 %v9509_v13 }
  0xa7   :  { %8535 = vmatpush3.bf16.msra.mxu1 %v9350_v34  ;;  %8417 = vmatprep.subr.bf16.mxu0 %v9517_v24 }
  0xa8   :  { %8537 = vmatprep.subr.bf16.mxu1 %v9437_v18 }
  0xaa   :  { %8419 = vmatpush3.bf16.msra.mxu0 %v9517_v24 }
  0xab   :  { %8539 = vmatpush3.bf16.msra.mxu1 %v9437_v18  ;;  %8421 = vmatprep.subr.bf16.mxu0 %v9533_v45 }
  0xac   :  { %8541 = vmatprep.subr.bf16.mxu1 %v9456_v48 }
  0xae   :  { %8423 = vmatpush3.bf16.msra.mxu0 %v9533_v45 }
  0xaf   :  { %8543 = vmatpush3.bf16.msra.mxu1 %v9456_v48  ;;  %8425 = vmatprep.subr.bf16.mxu0 %v9325_v21 }
  0xb0   :  { %8545 = vmatprep.subr.bf16.mxu1 %v9472_v57 }
  0xb1   :  { %7477 = vmatmul.mubr.f32.vlgmr.msra.gmra.mrb[0].mxu0 %v9602_v14 }
  0xb2   :  { %8427 = vmatpush3.bf16.msra.mxu0 %v9325_v21  ;;  %7511 = vmatprep.mubr.f32.mxu0 %v178_v37 }
  0xb3   :  { %8547 = vmatpush3.bf16.msra.mxu1 %v9472_v57  ;;  %8429 = vmatprep.subr.bf16.mxu0 %v9329_v23 }
  0xb4   :  { %8549 = vmatprep.subr.bf16.mxu1 %v9512_v15 }
  0xb6   :  { %8431 = vmatpush3.bf16.msra.mxu0 %v9329_v23 }
  0xb7   :  { %8551 = vmatpush3.bf16.msra.mxu1 %v9512_v15  ;;  %8433 = vmatprep.subr.bf16.mxu0 %v9342_v30 }
  0xb8   :  { %8553 = vmatprep.subr.bf16.mxu1 %v9404_v61 }
  0xba   :  { %8435 = vmatpush3.bf16.msra.mxu0 %v9342_v30  ;;  %7617 = vmatmul.mubr.f32.vlgmr.msra.gmra.mrb[2].mxu1 %v902_v29 }
  0xbb   :  { %8555 = vmatpush3.bf16.msra.mxu1 %v9404_v61  ;;  %7651 = vmatprep.mubr.msk.f32.mxu1 %vm801_vm1, %v9175_v16  ;;  %v9703_v61 = vpack.c.bf16 %v234_v41, %v227_v40  ;;  %v9748_v40 = vpack.c.bf16 %v10461_v38, %v283_v50  ;;  %v10462_v41 = vand.u32 4294901760, %v9470_v56 }
  0xbc   :  { %8437 = vmatprep.subr.bf16.mxu0 %v9350_v34  ;;  %8557 = vmatprep.subr.bf16.mxu1 %v9412_v2 }
  0xbe   :  { %8439 = vmatpush3.bf16.msra.mxu0 %v9350_v34 }
  0xbf   :  { %8559 = vmatpush3.bf16.msra.mxu1 %v9412_v2  ;;  %8441 = vmatprep.subr.bf16.mxu0 %v9437_v18  ;;  %v9714_v2 = vpack.c.bf16 %v248_v53, %v241_v49  ;;  %v9758_v49 = vpack.c.bf16 %v10463_v42, %v10462_v41 }
  0xc0   :  { %8561 = vmatprep.subr.bf16.mxu1 %v9422_v10 }
  0xc2   :  { %8443 = vmatpush3.bf16.msra.mxu0 %v9437_v18 }
  0xc3   :  { %8563 = vmatpush3.bf16.msra.mxu1 %v9422_v10  ;;  %8445 = vmatprep.subr.bf16.mxu0 %v9456_v48  ;;  %v2055_v10 = vld [vmem:[%s10431_s5 + $0x10] sm:$0xff] }
  0xc4   :  { %8565 = vmatprep.subr.bf16.mxu1 %v9435_v17 }
  0xc6   :  { %8447 = vmatpush3.bf16.msra.mxu0 %v9456_v48 }
  0xc7   :  { %8567 = vmatpush3.bf16.msra.mxu1 %v9435_v17  ;;  %8449 = vmatprep.subr.bf16.mxu0 %v9472_v57 }
  0xc8   :  { %8569 = vmatprep.subr.bf16.mxu1 %v9478_v60 }
  0xca   :  { %8451 = vmatpush3.bf16.msra.mxu0 %v9472_v57 }
  0xcb   :  { %8571 = vmatpush3.bf16.msra.mxu1 %v9478_v60  ;;  %8453 = vmatprep.subr.bf16.mxu0 %v9512_v15 }
  0xcc   :  { %8573 = vmatprep.subr.bf16.mxu1 %v9520_v26 }
  0xce   :  { %8455 = vmatpush3.bf16.msra.mxu0 %v9512_v15 }
  0xcf   :  { %8575 = vmatpush3.bf16.msra.mxu1 %v9520_v26  ;;  %8457 = vmatprep.subr.bf16.mxu0 %v9557_v0 }
  0xd0   :  { %8577 = vmatprep.subr.bf16.mxu1 %v9536_v51 }
  0xd1   :  { %7512 = vmatmul.mubr.f32.vlgmr.msra.gmra.mrb[0].mxu0 %v188_v4  ;;  %v2185_v4 = vand.u32 4294901760, %v2184_v59 }
  0xd2   :  { %8459 = vmatpush3.bf16.msra.mxu0 %v9557_v0  ;;  %7546 = vmatprep.mubr.msk.f32.mxu0 %vm73_vm0, %v9175_v16 }
  0xd3   :  { %8579 = vmatpush3.bf16.msra.mxu1 %v9536_v51  ;;  %8461 = vmatprep.subr.bf16.mxu0 %v9563_v1  ;;  %v1505_v51 = vld [vmem:[%s10433_s7] sm:$0xff] }
  0xd4   :  { %8581 = vmatprep.subr.bf16.mxu1 %v9542_v62 }
  0xd6   :  { %8463 = vmatpush3.bf16.msra.mxu0 %v9563_v1 }
  0xd7   :  { %8583 = vmatpush3.bf16.msra.mxu1 %v9542_v62  ;;  %8465 = vmatprep.subr.bf16.mxu0 %v9703_v61  ;;  %v1506_v62 = vld [vmem:[%s10433_s7 + $0x8] sm:$0xff] }
  0xd8   :  { %8585 = vmatprep.subr.bf16.mxu1 %v9549_v63 }
  0xda   :  { %8467 = vmatpush3.bf16.msra.mxu0 %v9703_v61  ;;  %7652 = vmatmul.mubr.msk.f32.vlgmr.msra.gmra.mrb[2].mxu1 %vm802_vm3, %v9175_v16 }
  0xdb   :  { %8587 = vmatpush3.bf16.msra.mxu1 %v9549_v63  ;;  %7686 = vmatprep.mubr.f32.mxu1 %v9587_v31  ;;  %v1524_v63 = vand.u32 4294901760, %v1505_v51  ;;  %v1530_v31 = vand.u32 4294901760, %v1507_v44 }
  0xdc   :  { %8469 = vmatprep.subr.bf16.mxu0 %v9714_v2  ;;  %8589 = vmatprep.subr.bf16.mxu1 %v9493_v6 }
  0xdd   :  { %v1614_v46 = vsub.f32 %v1505_v51, %v1524_v63 }
  0xde   :  { %8471 = vmatpush3.bf16.msra.mxu0 %v9714_v2 }
  0xdf   :  { %8591 = vmatpush3.bf16.msra.mxu1 %v9493_v6  ;;  %8473 = vmatprep.subr.bf16.mxu0 %v9727_v32  ;;  %v1615_v37 = vand.u32 4294901760, %v1614_v46 }
  0xe0   :  { %8593 = vmatprep.subr.bf16.mxu1 %v9497_v7 }
  0xe1   :  { %v1616_v58 = vsub.f32 %v1614_v46, %v1615_v37 }
  0xe2   :  { %8475 = vmatpush3.bf16.msra.mxu0 %v9727_v32 }
  0xe3   :  { %8595 = vmatpush3.bf16.msra.mxu1 %v9497_v7  ;;  %8477 = vmatprep.subr.bf16.mxu0 %v9738_v33  ;;  %v1617_v55 = vand.u32 4294901760, %v1616_v58 }
  0xe4   :  { %8597 = vmatprep.subr.bf16.mxu1 %v9501_v8 }
  0xe6   :  { %8479 = vmatpush3.bf16.msra.mxu0 %v9738_v33 }
  0xe7   :  { %8599 = vmatpush3.bf16.msra.mxu1 %v9501_v8  ;;  %8481 = vmatprep.subr.bf16.mxu0 %v9748_v40 }
  0xe8   :  { %8601 = vmatprep.subr.bf16.mxu1 %v9505_v9 }
  0xea   :  { %8483 = vmatpush3.bf16.msra.mxu0 %v9748_v40 }
  0xeb   :  { %8603 = vmatpush3.bf16.msra.mxu1 %v9505_v9  ;;  %8485 = vmatprep.subr.bf16.mxu0 %v9758_v49 }
  0xec   :  { %8605 = vmatprep.subr.bf16.mxu1 %v9509_v13 }
  0xee   :  { %8487 = vmatpush3.bf16.msra.mxu0 %v9758_v49 }
  0xef   :  { %8607 = vmatpush3.bf16.msra.mxu1 %v9509_v13  ;;  %8489 = vmatprep.subr.bf16.mxu0 %v9325_v21 }
  0xf0   :  { %8609 = vmatprep.subr.bf16.mxu1 %v9517_v24 }
  0xf1   :  { %7547 = vmatmul.mubr.msk.f32.vlgmr.msra.gmra.mrb[0].mxu0 %vm74_vm2, %v9175_v16 }
  0xf2   :  { %8491 = vmatpush3.bf16.msra.mxu0 %v9325_v21  ;;  %7581 = vmatprep.mubr.msk.f32.mxu0 %vm73_vm0, %v9175_v16 }
  0xf3   :  { %8611 = vmatpush3.bf16.msra.mxu1 %v9517_v24  ;;  %8493 = vmatprep.subr.bf16.mxu0 %v9329_v23 }
  0xf4   :  { %8613 = vmatprep.subr.bf16.mxu1 %v9533_v45 }
  0xf6   :  { %8495 = vmatpush3.bf16.msra.mxu0 %v9329_v23 }
  0xf7   :  { %8615 = vmatpush3.bf16.msra.mxu1 %v9533_v45  ;;  %8497 = vmatprep.subr.bf16.mxu0 %v9342_v30 }
  0xf8   :  { %8617 = vmatprep.subr.bf16.mxu1 %v9325_v21 }
  0xfa   :  { %8499 = vmatpush3.bf16.msra.mxu0 %v9342_v30  ;;  %7687 = vmatmul.mubr.f32.vlgmr.msra.gmra.mrb[2].mxu1 %v9642_v27  ;;  %v1628_v27 = vsub.f32 %v1507_v44, %v1530_v31 }
  0xfb   :  { %8619 = vmatpush3.bf16.msra.mxu1 %v9325_v21  ;;  %7721 = vmatprep.mubr.f32.mxu1 %v890_v52 }
  0xfc   :  { %8501 = vmatprep.subr.bf16.mxu0 %v9350_v34  ;;  %8621 = vmatprep.subr.bf16.mxu1 %v9329_v23 }
  0xfe   :  { %8503 = vmatpush3.bf16.msra.mxu0 %v9350_v34 }
  0xff   :  { %8623 = vmatpush3.bf16.msra.mxu1 %v9329_v23  ;;  %8505 = vmatprep.subr.bf16.mxu0 %v9437_v18 }
 0x100   :  { %8625 = vmatprep.subr.bf16.mxu1 %v9342_v30 }
 0x102   :  { %8507 = vmatpush3.bf16.msra.mxu0 %v9437_v18 }
 0x103   :  { %8627 = vmatpush3.bf16.msra.mxu1 %v9342_v30  ;;  %8509 = vmatprep.subr.bf16.mxu0 %v9456_v48 }
 0x104   :  { %8629 = vmatprep.subr.bf16.mxu1 %v9350_v34 }
 0x106   :  { %8511 = vmatpush3.bf16.msra.mxu0 %v9456_v48 }
 0x107   :  { %8631 = vmatpush3.bf16.msra.mxu1 %v9350_v34  ;;  %8513 = vmatprep.subr.bf16.mxu0 %v9472_v57 }
 0x108   :  { %8633 = vmatprep.subr.bf16.mxu1 %v9437_v18 }
 0x10a   :  { %8515 = vmatpush3.bf16.msra.mxu0 %v9472_v57 }
 0x10b   :  { %8635 = vmatpush3.bf16.msra.mxu1 %v9437_v18  ;;  %8517 = vmatprep.subr.bf16.mxu0 %v9512_v15 }
 0x10c   :  { %8637 = vmatprep.subr.bf16.mxu1 %v9456_v48 }
 0x10e   :  { %8519 = vmatpush3.bf16.msra.mxu0 %v9512_v15 }
 0x10f   :  { %8639 = vmatpush3.bf16.msra.mxu1 %v9456_v48 }
 0x110   :  { %8641 = vmatprep.subr.bf16.mxu1 %v9472_v57 }
 0x111   :  { %7582 = vmatmul.mubr.msk.f32.vlgmr.msra.gmra.mrb[0].mxu0 %vm74_vm2, %v9175_v16 }
 0x113   :  { %8643 = vmatpush3.bf16.msra.mxu1 %v9472_v57 }
 0x114   :  { %8645 = vmatprep.subr.bf16.mxu1 %v9512_v15 }
 0x117   :  { %8647 = vmatpush3.bf16.msra.mxu1 %v9512_v15 }
 0x118   :  { %8649 = vmatprep.subr.bf16.mxu1 %v9557_v0 }
 0x11a   :  { %7722 = vmatmul.mubr.f32.vlgmr.msra.gmra.mrb[2].mxu1 %v900_v28 }
 0x11b   :  { %8651 = vmatpush3.bf16.msra.mxu1 %v9557_v0  ;;  %7756 = vmatprep.mubr.msk.f32.mxu1 %vm801_vm1, %v9175_v16  ;;  %v1527_v0 = vand.u32 4294901760, %v1506_v62 }
 0x11c   :  { %8653 = vmatprep.subr.bf16.mxu1 %v9563_v1 }
 0x11d   :  { %v1621_v47 = vsub.f32 %v1506_v62, %v1527_v0 }
 0x11f   :  { %8655 = vmatpush3.bf16.msra.mxu1 %v9563_v1  ;;  %v9899_v1 = vpack.c.bf16 %v1527_v0, %v1524_v63  ;;  %v1622_v52 = vand.u32 4294901760, %v1621_v47 }
 0x120   :  { %8657 = vmatprep.subr.bf16.mxu1 %v9703_v61 }
 0x121   :  { %8713 = vmatprep.subr.bf16.mxu0 %v9899_v1  ;;  %v1623_v3 = vsub.f32 %v1621_v47, %v1622_v52 }
 0x122   :  { %8715 = vmatpush3.bf16.msra.mxu0 %v9899_v1 }
 0x123   :  { %8659 = vmatpush3.bf16.msra.mxu1 %v9703_v61  ;;  %v1624_v29 = vand.u32 4294901760, %v1623_v3  ;;  %v1629_v61 = vand.u32 4294901760, %v1628_v27 }
 0x124   :  { %8661 = vmatprep.subr.bf16.mxu1 %v9714_v2 }
 0x127   :  { %8663 = vmatpush3.bf16.msra.mxu1 %v9714_v2 }
 0x128   :  { %8665 = vmatprep.subr.bf16.mxu1 %v9727_v32 }
 0x12b   :  { %8667 = vmatpush3.bf16.msra.mxu1 %v9727_v32  ;;  %v9913_v32 = vpack.c.bf16 %v1624_v29, %v1617_v55 }
 0x12c   :  { %8669 = vmatprep.subr.bf16.mxu1 %v9738_v33 }
 0x12f   :  { %8671 = vmatpush3.bf16.msra.mxu1 %v9738_v33  ;;  %v1630_v33 = vsub.f32 %v1628_v27, %v1629_v61 }
 0x130   :  { %8673 = vmatprep.subr.bf16.mxu1 %v9748_v40 }
 0x133   :  { %8675 = vmatpush3.bf16.msra.mxu1 %v9748_v40  ;;  %v1631_v40 = vand.u32 4294901760, %v1630_v33 }
 0x134   :  { %8677 = vmatprep.subr.bf16.mxu1 %v9758_v49 }
 0x137   :  { %8679 = vmatpush3.bf16.msra.mxu1 %v9758_v49  ;;  %v9918_v49 = vpack.c.bf16 %v1621_v47, %v1614_v46 }
 0x138   :  { %8681 = vmatprep.subr.bf16.mxu1 %v9325_v21 }
 0x13a   :  { %7757 = vmatmul.mubr.msk.f32.vlgmr.msra.gmra.mrb[2].mxu1 %vm802_vm3, %v9175_v16 }
 0x13b   :  { %8683 = vmatpush3.bf16.msra.mxu1 %v9325_v21  ;;  %7791 = vmatprep.mubr.msk.f32.mxu1 %vm801_vm1, %v9175_v16  ;;  %v2053_v21 = vld [vmem:[%s10431_s5] sm:$0xff] }
 0x13c   :  { %8685 = vmatprep.subr.bf16.mxu1 %v9329_v23 }
 0x13f   :  { %8687 = vmatpush3.bf16.msra.mxu1 %v9329_v23  ;;  %v2054_v23 = vld [vmem:[%s10431_s5 + $0x8] sm:$0xff] }
 0x140   :  { %8689 = vmatprep.subr.bf16.mxu1 %v9342_v30 }
 0x143   :  { %8691 = vmatpush3.bf16.msra.mxu1 %v9342_v30  ;;  %v2071_v30 = vand.u32 4294901760, %v2053_v21 }
 0x144   :  { %8693 = vmatprep.subr.bf16.mxu1 %v9350_v34 }
 0x145   :  { %v2161_v53 = vsub.f32 %v2053_v21, %v2071_v30 }
 0x147   :  { %8695 = vmatpush3.bf16.msra.mxu1 %v9350_v34  ;;  %v2074_v34 = vand.u32 4294901760, %v2054_v23  ;;  %v2162_v12 = vand.u32 4294901760, %v2161_v53 }
 0x148   :  { %8697 = vmatprep.subr.bf16.mxu1 %v9437_v18 }
 0x149   :  { %v2168_v5 = vsub.f32 %v2054_v23, %v2074_v34  ;;  %v2163_v20 = vsub.f32 %v2161_v53, %v2162_v12  ;;  %v9880_v7 = vpack.c.bf16 %v2074_v34, %v2071_v30  ;;  %v9922_v23 = vpack.c.bf16 %v1622_v52, %v1615_v37  ;;  %v1501_v34 = vpop.permute.xlu1 %1500 }
 0x14b   :  { %8699 = vmatpush3.bf16.msra.mxu1 %v9437_v18  ;;  %v2169_v17 = vand.u32 4294901760, %v2168_v5  ;;  %v2077_v18 = vand.u32 4294901760, %v2055_v10  ;;  %v2164_v43 = vand.u32 4294901760, %v2163_v20  ;;  %v9884_v9 = vpack.c.bf16 %v2168_v5, %v2161_v53  ;;  %v1496_v53 = vpop.permute.xlu0 %1495 }
 0x14c   :  { %8701 = vmatprep.subr.bf16.mxu1 %v9456_v48 }
 0x14d   :  { %v2170_v25 = vsub.f32 %v2168_v5, %v2169_v17  ;;  %v2175_v35 = vsub.f32 %v2055_v10, %v2077_v18  ;;  %v9882_v8 = vpack.c.bf16 %v2080_v19, %v2077_v18  ;;  %v9889_v26 = vpack.c.bf16 %v2169_v17, %v2162_v12  ;;  %v789_v12 = vpop.permute.xlu1 %788 }
 0x14f   :  { %8703 = vmatpush3.bf16.msra.mxu1 %v9456_v48  ;;  %v2171_v48 = vand.u32 4294901760, %v2170_v25  ;;  %v2176_v50 = vand.u32 4294901760, %v2175_v35  ;;  %v9887_v24 = vpack.c.bf16 %v2182_v39, %v2175_v35  ;;  %v784_v18 = vpop.permute.xlu0 %783 }
 0x150   :  { %8705 = vmatprep.subr.bf16.mxu1 %v9472_v57 }
 0x151   :  { %v8768_v56 = vpack.c.bf16 %v2171_v48, %v2164_v43  ;;  %v9891_v45 = vpack.c.bf16 %v2183_v54, %v2176_v50 }
 0x153   :  { %8707 = vmatpush3.bf16.msra.mxu1 %v9472_v57  ;;  %v2177_v57 = vsub.f32 %v2175_v35, %v2176_v50 }
 0x154   :  { %8709 = vmatprep.subr.bf16.mxu1 %v9512_v15 }
 0x155   :  { %v2178_v60 = vand.u32 4294901760, %v2177_v57 }
 0x157   :  { %8711 = vmatpush3.bf16.msra.mxu1 %v9512_v15  ;;  %v8772_v6 = vpack.c.bf16 %v2185_v4, %v2178_v60  ;;  %v9177_v60 = vmov 0.0|0.0  }
 0x158   :  { %8769 = vmatprep.subr.bf16.mxu1 %v8768_v56 }
 0x15a   :  { %7792 = vmatmul.mubr.msk.f32.vlgmr.msra.gmra.mrb[2].mxu1 %vm802_vm3, %v9175_v16  ;;  %v1508_v16 = vld [vmem:[%s10433_s7 + $0x18] sm:$0xff] }
 0x15b   :  { %8771 = vmatpush3.bf16.msra.mxu1 %v8768_v56  ;;  %v1533_v36 = vand.u32 4294901760, %v1508_v16 }
 0x15c   :  { %8773 = vmatprep.subr.bf16.mxu1 %v8772_v6 }
 0x15d   :  { %v9909_v14 = vpack.c.bf16 %v1533_v36, %v1530_v31  ;;  %v1635_v28 = vsub.f32 %v1508_v16, %v1533_v36 }
 0x15f   :  { %8775 = vmatpush3.bf16.msra.mxu1 %v8772_v6  ;;  %8717 = vmatprep.subr.bf16.mxu0 %v9909_v14  ;;  %v1636_v2 = vand.u32 4294901760, %v1635_v28  ;;  %v9920_v21 = vpack.c.bf16 %v1635_v28, %v1628_v27 }
 0x160   :  { %8777 = vmatprep.subr.bf16.mxu1 %v9884_v9  ;;  %8719 = vmatpush3.bf16.msra.mxu0 %v9909_v14 }
 0x161   :  { %v1637_v38 = vsub.f32 %v1635_v28, %v1636_v2  ;;  %8721 = vmatprep.subr.bf16.mxu0 %v9913_v32  ;;  %v9924_v30 = vpack.c.bf16 %v1636_v2, %v1629_v61 }
 0x163   :  { %v1638_v41 = vand.u32 4294901760, %v1637_v38 }
 0x165   :  { %v9916_v42 = vpack.c.bf16 %v1638_v41, %v1631_v40 }
 0x16d   :  { %v7408_v13 = vpop.f32.mrb[0].mxu1 }
 0x16e   :  { %v182_v15 = vpop.f32.mrb[1].mxu1 }
 0x1e4   :  { %v7583_v5 = vpop.f32.mrb[0].mxu0 }
 0x1e5   :  { %v8970_v10 = vadd.f32 %v7583_v5, %v7408_v13  ;;  %v769_v11 = vpop.f32.mrb[1].mxu0 }
 0x1e6   :  { %v8971_v17 = vadd.f32 %v769_v11, %v182_v15 }
 0x1e7   :  { %v792_v19 = vmul.f32 %v8970_v10, %v789_v12 }
 0x1e8   :  { %v791_v20 = vmul.f32 %v8971_v17, %v784_v18  ;;  %v3064_v17 = vld [vmem:[%s10435_s9 + $0x10] sm:$0xff]  ;;  %v3065_v18 = vld [vmem:[%s10435_s9 + $0x18] sm:$0xff] }
 0x1e9   :  { %v2068_v25 = vsel %vm1516_vm4, %v792_v19, 0  ;;  %v3083_v19 = vand.u32 4294901760, %v3064_v17 }
 0x1ea   :  { %v2149_v35 = vand.u32 4294901760, %v2068_v25  ;;  %v2065_v39 = vsel %vm1516_vm4, %v791_v20, 0  ;;  %v3086_v20 = vand.u32 4294901760, %v3065_v18 }
 0x1eb   :  { %v2139_v43 = vand.u32 4294901760, %v2065_v39 }
 0x1ec   :  { %v2150_v48 = vsub.f32 %v2068_v25, %v2149_v35 }
 0x1ed   :  { %7879 = vmatprep.mubr.f32.mxu1 %v2139_v43  ;;  %v2140_v50 = vsub.f32 %v2065_v39, %v2139_v43  ;;  %v10045_v39 = vpack.c.bf16 %v3086_v20, %v3083_v19 }
 0x1ee   :  { %7880 = vmatmul.mubr.f32.vlgmr.msra.gmra.mrb[4].mxu1 %v2149_v35  ;;  %v2151_v54 = vand.u32 4294901760, %v2150_v48 }
 0x1ef   :  { %8779 = vmatpush3.bf16.msra.mxu1 %v9884_v9  ;;  %7890 = vmatprep.mubr.f32.mxu1 %v2140_v50  ;;  %v2141_v56 = vand.u32 4294901760, %v2140_v50 }
 0x1f0   :  { %8781 = vmatprep.subr.bf16.mxu1 %v9887_v24  ;;  %v9930_v57 = vsub.f32 %v2150_v48, %v2151_v54 }
 0x1f1   :  { %v9932_v59 = vsub.f32 %v2140_v50, %v2141_v56 }
 0x1f3   :  { %8783 = vmatpush3.bf16.msra.mxu1 %v9887_v24 }
 0x1f4   :  { %8785 = vmatprep.subr.bf16.mxu1 %v9880_v7 }
 0x1f6   :  { %7891 = vmatmul.mubr.f32.vlgmr.msra.gmra.mrb[4].mxu1 %v2150_v48  ;;  %v10049_v48 = vsub.f32 %v3065_v18, %v3086_v20  ;;  %v6910_v20 = vld [vmem:[%s10436_s10] ss:$0 sm:$0xff] }
 0x1f7   :  { %8787 = vmatpush3.bf16.msra.mxu1 %v9880_v7  ;;  %7901 = vmatprep.mubr.f32.mxu1 %v2141_v56 }
 0x1f8   :  { %8789 = vmatprep.subr.bf16.mxu1 %v9882_v8 }
 0x1fb   :  { %8791 = vmatpush3.bf16.msra.mxu1 %v9882_v8 }
 0x1fc   :  { %8793 = vmatprep.subr.bf16.mxu1 %v9889_v26 }
 0x1fe   :  { %7902 = vmatmul.mubr.f32.vlgmr.msra.gmra.mrb[4].mxu1 %v2151_v54 }
 0x1ff   :  { %8795 = vmatpush3.bf16.msra.mxu1 %v9889_v26  ;;  %7912 = vmatprep.mubr.f32.mxu1 %v2139_v43 }
 0x200   :  { %8797 = vmatprep.subr.bf16.mxu1 %v9891_v45 }
 0x203   :  { %8799 = vmatpush3.bf16.msra.mxu1 %v9891_v45 }
 0x204   :  { %8801 = vmatprep.subr.bf16.mxu1 %v9880_v7 }
 0x206   :  { %7913 = vmatmul.mubr.f32.vlgmr.msra.gmra.mrb[4].mxu1 %v2149_v35 }
 0x207   :  { %8803 = vmatpush3.bf16.msra.mxu1 %v9880_v7  ;;  %7923 = vmatprep.mubr.f32.mxu1 %v2139_v43  ;;  %v10047_v43 = vsub.f32 %v3064_v17, %v3083_v19 }
 0x208   :  { %8805 = vmatprep.subr.bf16.mxu1 %v9882_v8 }
 0x20b   :  { %8807 = vmatpush3.bf16.msra.mxu1 %v9882_v8 }
 0x20c   :  { %8826 = vmatprep.subr.bf16.mxu1 %v9177_v60 }
 0x20e   :  { %7924 = vmatmul.mubr.f32.vlgmr.msra.gmra.mrb[4].mxu1 %v2149_v35 }
 0x20f   :  { %7976 = vmatprep.mubr.msk.f32.mxu1 %vm9178_vm5, %v9176_v22 }
 0x22d   :  { %v7793_v4 = vpop.f32.mrb[2].mxu1 }
 0x22e   :  { %v1504_v6 = vmul.f32 %v7793_v4, %v1501_v34  ;;  %v1481_v9 = vpop.f32.mrb[3].mxu1  ;;  %v3063_v34 = vld [vmem:[%s10435_s9 + $0x8] sm:$0xff] }
 0x22f   :  { %v1503_v13 = vmul.f32 %v1496_v53, %v1481_v9  ;;  %v3080_v5 = vand.u32 4294901760, %v3063_v34 }
 0x230   :  { %v1521_v15 = vsel %vm1516_vm4, %v1504_v6, 0  ;;  %v2607_v24 = vand.u32 4294901760, %v1504_v6 }
 0x231   :  { %v1602_v26 = vand.u32 4294901760, %v1521_v15  ;;  %v1518_v45 = vsel %vm1516_vm4, %v1503_v13, 0  ;;  %v2604_v51 = vand.u32 4294901760, %v1503_v13  ;;  %v10033_v12 = vsub.f32 %v3063_v34, %v3080_v5 }
 0x232   :  { %v9952_v62 = vsub.f32 %v1504_v6, %v2607_v24  ;;  %v1592_v63 = vand.u32 4294901760, %v1518_v45 }
 0x233   :  { %v1603_v0 = vsub.f32 %v1521_v15, %v1602_v26  ;;  %v9954_v46 = vpack.c.bf16 %v2607_v24, %v2604_v51  ;;  %v9956_v47 = vsub.f32 %v1503_v13, %v2604_v51  ;;  %v3165_v35 = vand.u32 4294901760, %v10033_v12 }
 0x234   :  { %v2690_v44 = vand.u32 4294901760, %v9952_v62  ;;  %v1593_v16 = vsub.f32 %v1518_v45, %v1592_v63  ;;  %v8842_v51 = vpack.c.bf16 %v10049_v48, %v10047_v43 }
 0x235   :  { %v2683_v31 = vand.u32 4294901760, %v9956_v47  ;;  %v1604_v36 = vand.u32 4294901760, %v1603_v0  ;;  %v8815_v37 = vpack.c.bf16 %v9952_v62, %v9956_v47  ;;  %v3166_v54 = vsub.f32 %v10033_v12, %v3165_v35 }
 0x236   :  { %v2691_v52 = vsub.f32 %v9952_v62, %v2690_v44  ;;  %v1594_v58 = vand.u32 4294901760, %v1593_v16 }
 0x237   :  { %v2684_v3 = vsub.f32 %v9956_v47, %v2683_v31  ;;  %v1605_v27 = vsub.f32 %v1603_v0, %v1604_v36  ;;  %v9964_v28 = vpack.c.bf16 %v2690_v44, %v2683_v31  ;;  %v3167_v4 = vand.u32 4294901760, %v3166_v54  ;;  %v6909_v31 = vld [vmem:[%s10432_s6] ss:$0 sm:$0xff] }
 0x238   :  { %v1595_v55 = vsub.f32 %v1593_v16, %v1594_v58  ;;  %v2692_v29 = vand.u32 4294901760, %v2691_v52 }
 0x239   :  { %v2685_v61 = vand.u32 4294901760, %v2684_v3  ;;  %v1606_v33 = vand.u32 4294901760, %v1605_v27 }
 0x23a   :  { %v1596_v2 = vand.u32 4294901760, %v1595_v55 }
 0x23b   :  { %v8812_v38 = vpack.c.bf16 %v2692_v29, %v2685_v61 }
 0x23c   :  { %7802 = vmatprep.mubr.f32.mxu0 %v1596_v2 }
 0x23d   :  { %7803 = vmatmul.mubr.f32.vlgmr.msra.gmra.mrb[2].mxu0 %v1606_v33 }
 0x23e   :  { %8723 = vmatpush3.bf16.msra.mxu0 %v9913_v32  ;;  %7813 = vmatprep.mubr.f32.mxu0 %v1592_v63  ;;  %v2598_v32 = vld [vmem:[%s10439_s13] sm:$0x3] }
 0x23f   :  { %8725 = vmatprep.subr.bf16.mxu0 %v9916_v42  ;;  %v2601_v40 = vsel %vm2599_vm6, %v2598_v32, 0 }
 0x240   :  { %v2670_v41 = vand.u32 4294901760, %v2601_v40 }
 0x242   :  { %8727 = vmatpush3.bf16.msra.mxu0 %v9916_v42  ;;  %v2671_v42 = vsub.f32 %v2601_v40, %v2670_v41 }
 0x243   :  { %8729 = vmatprep.subr.bf16.mxu0 %v9918_v49 }
 0x245   :  { %7814 = vmatmul.mubr.f32.vlgmr.msra.gmra.mrb[2].mxu0 %v1602_v26 }
 0x246   :  { %8731 = vmatpush3.bf16.msra.mxu0 %v9918_v49  ;;  %7824 = vmatprep.mubr.f32.mxu0 %v1593_v16  ;;  %v2143_v49 = vand.u32 4294901760, %v9932_v59  ;;  %v3179_v59 = vand.u32 4294901760, %v10049_v48 }
 0x247   :  { %8733 = vmatprep.subr.bf16.mxu0 %v9920_v21 }
 0x248   :  { %v3180_v9 = vsub.f32 %v10049_v48, %v3179_v59 }
 0x24a   :  { %8735 = vmatpush3.bf16.msra.mxu0 %v9920_v21  ;;  %v2672_v21 = vand.u32 4294901760, %v2671_v42  ;;  %v3181_v24 = vand.u32 4294901760, %v3180_v9 }
 0x24b   :  { %8737 = vmatprep.subr.bf16.mxu0 %v9899_v1 }
 0x24d   :  { %7825 = vmatmul.mubr.f32.vlgmr.msra.gmra.mrb[2].mxu0 %v1603_v0  ;;  %v6908_v0 = vld [vmem:[%s10434_s8] ss:$0 sm:$0xff] }
 0x24e   :  { %8739 = vmatpush3.bf16.msra.mxu0 %v9899_v1  ;;  %7835 = vmatprep.mubr.f32.mxu0 %v1594_v58 }
 0x24f   :  { %8741 = vmatprep.subr.bf16.mxu0 %v9909_v14 }
 0x252   :  { %8743 = vmatpush3.bf16.msra.mxu0 %v9909_v14 }
 0x253   :  { %8745 = vmatprep.subr.bf16.mxu0 %v9922_v23 }
 0x255   :  { %7836 = vmatmul.mubr.f32.vlgmr.msra.gmra.mrb[2].mxu0 %v1604_v36 }
 0x256   :  { %8747 = vmatpush3.bf16.msra.mxu0 %v9922_v23  ;;  %7846 = vmatprep.mubr.f32.mxu0 %v1592_v63  ;;  %v2673_v23 = vsub.f32 %v2671_v42, %v2672_v21 }
 0x257   :  { %8749 = vmatprep.subr.bf16.mxu0 %v9924_v30 }
 0x25a   :  { %8751 = vmatpush3.bf16.msra.mxu0 %v9924_v30  ;;  %v3062_v30 = vld [vmem:[%s10435_s9] sm:$0xff] }
 0x25b   :  { %8753 = vmatprep.subr.bf16.mxu0 %v9899_v1  ;;  %v3077_v53 = vand.u32 4294901760, %v3062_v30 }
 0x25d   :  { %7847 = vmatmul.mubr.f32.vlgmr.msra.gmra.mrb[2].mxu0 %v1602_v26  ;;  %v10029_v10 = vpack.c.bf16 %v3080_v5, %v3077_v53  ;;  %v10031_v11 = vsub.f32 %v3062_v30, %v3077_v53 }
 0x25e   :  { %8755 = vmatpush3.bf16.msra.mxu0 %v9899_v1  ;;  %7857 = vmatprep.mubr.f32.mxu0 %v1592_v63  ;;  %v2153_v1 = vand.u32 4294901760, %v9930_v57  ;;  %v3172_v57 = vand.u32 4294901760, %v10047_v43 }
 0x25f   :  { %8757 = vmatprep.subr.bf16.mxu0 %v9909_v14  ;;  %8828 = vmatpush3.bf16.msra.mxu1 %v10029_v10  ;;  %v3158_v25 = vand.u32 4294901760, %v10031_v11  ;;  %v8839_v45 = vpack.c.bf16 %v10033_v12, %v10031_v11  ;;  %v3561_v12 = vld [vmem:[%s10440_s14] sm:$0xff] }
 0x260   :  { %8829 = vmatprep.subr.bf16.mxu1 %v9177_v60  ;;  %v3173_v6 = vsub.f32 %v10047_v43, %v3172_v57  ;;  %v8854_v63 = vpack.c.bf16 %v3179_v59, %v3172_v57  ;;  %v3564_v17 = vsel %vm3562_vm7, %v3561_v12, 0 }
 0x261   :  { %v3159_v50 = vsub.f32 %v10031_v11, %v3158_v25  ;;  %v8851_v62 = vpack.c.bf16 %v3165_v35, %v3158_v25 }
 0x262   :  { %8759 = vmatpush3.bf16.msra.mxu0 %v9909_v14  ;;  %v2674_v14 = vand.u32 4294901760, %v2673_v23  ;;  %v3174_v15 = vand.u32 4294901760, %v3173_v6 }
 0x263   :  { %8761 = vmatprep.subr.bf16.mxu0 %v9880_v7  ;;  %8831 = vmatpush3.bf16.msra.mxu1 %v10045_v39  ;;  %v3160_v56 = vand.u32 4294901760, %v3159_v50 }
 0x264   :  { %8832 = vmatprep.subr.bf16.mxu1 %v9177_v60 }
 0x265   :  { %7858 = vmatmul.mubr.f32.vlgmr.msra.gmra.mrb[2].mxu0 %v1602_v26  ;;  %v8833_v13 = vpack.c.bf16 %v3167_v4, %v3160_v56  ;;  %v8836_v26 = vpack.c.bf16 %v3181_v24, %v3174_v15 }
 0x266   :  { %8763 = vmatpush3.bf16.msra.mxu0 %v9880_v7  ;;  %7868 = vmatprep.mubr.f32.mxu0 %v2143_v49 }
 0x267   :  { %8765 = vmatprep.subr.bf16.mxu0 %v9882_v8 }
 0x26a   :  { %8767 = vmatpush3.bf16.msra.mxu0 %v9882_v8 }
 0x26b   :  { %8808 = vmatprep.subr.bf16.mxu0 %v9177_v60 }
 0x26d   :  { %7869 = vmatmul.mubr.f32.vlgmr.msra.gmra.mrb[4].mxu0 %v2153_v1 }
 0x26e   :  { %8810 = vmatpush3.bf16.msra.mxu0 %v9954_v46  ;;  %7930 = vmatprep.mubr.msk.f32.mxu0 %vm9178_vm5, %v9176_v22 }
 0x26f   :  { %8811 = vmatprep.subr.bf16.mxu0 %v9177_v60 }
 0x271   :  { %7931 = vmatmul.mubr.f32.vlgmr.msra.gmra.mrb[6].mxu0 %v2674_v14 }
 0x272   :  { %8813 = vmatpush3.bf16.msra.mxu0 %v8812_v38  ;;  %7937 = vmatprep.mubr.msk.f32.mxu0 %vm9178_vm5, %v9176_v22 }
 0x273   :  { %8814 = vmatprep.subr.bf16.mxu0 %v9177_v60 }
 0x279   :  { %7938 = vmatmul.mubr.f32.vlgmr.msra.gmra.mrb[6].mxu0 %v2670_v41 }
 0x27a   :  { %8816 = vmatpush3.bf16.msra.mxu0 %v8815_v37  ;;  %7944 = vmatprep.mubr.msk.f32.mxu0 %vm9178_vm5, %v9176_v22 }
 0x27b   :  { %8817 = vmatprep.subr.bf16.mxu0 %v9177_v60 }
 0x281   :  { %7945 = vmatmul.mubr.f32.vlgmr.msra.gmra.mrb[6].mxu0 %v2671_v42 }
 0x282   :  { %8819 = vmatpush3.bf16.msra.mxu0 %v9954_v46  ;;  %7951 = vmatprep.mubr.msk.f32.mxu0 %vm9178_vm5, %v9176_v22 }
 0x283   :  { %8820 = vmatprep.subr.bf16.mxu0 %v9177_v60 }
 0x289   :  { %7952 = vmatmul.mubr.f32.vlgmr.msra.gmra.mrb[6].mxu0 %v2672_v21 }
 0x28a   :  { %8822 = vmatpush3.bf16.msra.mxu0 %v9964_v28  ;;  %7958 = vmatprep.mubr.msk.f32.mxu0 %vm9178_vm5, %v9176_v22 }
 0x28b   :  { %8823 = vmatprep.subr.bf16.mxu0 %v9177_v60 }
 0x291   :  { %7959 = vmatmul.mubr.f32.vlgmr.msra.gmra.mrb[6].mxu0 %v2670_v41 }
 0x292   :  { %8825 = vmatpush3.bf16.msra.mxu0 %v9954_v46  ;;  %7965 = vmatprep.mubr.msk.f32.mxu0 %vm9178_vm5, %v9176_v22 }
 0x293   :  { %8034 = vmatprep.subr.mxu0 %v9176_v22 }
 0x299   :  { %7966 = vmatmul.mubr.f32.vlgmr.msra.gmra.mrb[6].mxu0 %v2670_v41 }
 0x29a   :  { %8036 = vmatprep.mubr.msk.f32.mxu0 %vm9178_vm5, %v9176_v22 }
 0x2e1   :  { %v7925_v7 = vpop.f32.mrb[4].mxu1 }
 0x2e2   :  { %v2588_v8 = vpop.f32.mrb[5].mxu1 }
 0x338   :  { %v7859_v46 = vpop.f32.mrb[2].mxu0 }
 0x339   :  { %v8972_v47 = vadd.f32 %v7859_v46, %v6908_v0  ;;  %v2041_v44 = vpop.f32.mrb[3].mxu0 }
 0x33a   :  { %v8973_v16 = vadd.f32 %v6908_v0, %v2041_v44 }
 0x33b   :  { %2052 = vst [vmem:[#allocation4 + $0x8] sm:$0xff] %v8972_v47  ;;  %v4019_v47 = vld [vmem:[%s10443_s17] sm:$0xff] }
 0x33c   :  { %2051 = vst [vmem:[#allocation4] sm:$0xff] %v8973_v16 }
 0x340   :  { %v7870_v36 = vpop.f32.mrb[4].mxu0 }
 0x341   :  { %v2156_v37 = vadd.f32 %v7870_v36, %v6909_v31  ;;  %v2145_v52 = vpop.f32.mrb[5].mxu0 }
 0x342   :  { %v2146_v58 = vadd.f32 %v6909_v31, %v2145_v52 }
 0x343   :  { %v10069_v3 = vadd.f32 %v7925_v7, %v2156_v37 }
 0x344   :  { %v10071_v27 = vadd.f32 %v2588_v8, %v2146_v58 }
 0x345   :  { %v10075_v28 = vsel %vm1516_vm4, %v10069_v3, 0 }
 0x346   :  { %v10079_v55 = vsel %vm1516_vm4, %v10071_v27, 0  ;;  %v4033_v29 = vand.u32 4294901760, %v10075_v28 }
 0x347   :  { %v4030_v61 = vand.u32 4294901760, %v10079_v55 }
 0x348   :  { %v10086_v2 = vsub.f32 %v10075_v28, %v4033_v29 }
 0x349   :  { %v10091_v33 = vsub.f32 %v10079_v55, %v4030_v61  ;;  %v8863_v6 = vpack.c.bf16 %v4033_v29, %v4030_v61 }
 0x34a   :  { %v4116_v38 = vand.u32 4294901760, %v10086_v2 }
 0x34b   :  { %v4109_v32 = vand.u32 4294901760, %v10091_v33  ;;  %v8869_v40 = vpack.c.bf16 %v10086_v2, %v10091_v33 }
 0x34c   :  { %v4117_v41 = vsub.f32 %v10086_v2, %v4116_v38 }
 0x34d   :  { %v4110_v42 = vsub.f32 %v10091_v33, %v4109_v32  ;;  %v10099_v49 = vpack.c.bf16 %v4116_v38, %v4109_v32 }
 0x34e   :  { %v4118_v21 = vand.u32 4294901760, %v4117_v41 }
 0x34f   :  { %v4111_v23 = vand.u32 4294901760, %v4110_v42 }
 0x351   :  { %v10101_v1 = vpack.c.bf16 %v4118_v21, %v4111_v23 }
 0x36c   :  { %v3058_v14 = vpop.f32.mrb[6].mxu0 }
 0x36d   :  { %v3074_v7 = vsel %vm1516_vm4, %v3058_v14, 0  ;;  %v7967_v8 = vpop.f32.mrb[7].mxu0 }
 0x36e   :  { %v3145_v30 = vand.u32 4294901760, %v3074_v7 }
 0x370   :  { %v3146_v34 = vsub.f32 %v3074_v7, %v3145_v30 }
 0x372   :  { %v3147_v53 = vand.u32 4294901760, %v3146_v34 }
 0x374   :  { %v3148_v5 = vsub.f32 %v3146_v34, %v3147_v53 }
 0x376   :  { %v3149_v11 = vand.u32 4294901760, %v3148_v5 }
 0x378   :  { %7977 = vmatmul.mubr.f32.vlgmr.msra.gmra.mrb[6].mxu1 %v3149_v11 }
 0x379   :  { %8834 = vmatpush3.bf16.msra.mxu1 %v8833_v13  ;;  %7987 = vmatprep.mubr.msk.f32.mxu1 %vm9178_vm5, %v9176_v22  ;;  %v10162_v13 = vld [vmem:[%s10442_s16] sm:$0xff] }
 0x37a   :  { %8835 = vmatprep.subr.bf16.mxu1 %v9177_v60 }
 0x37d   :  { %8837 = vmatpush3.bf16.msra.mxu1 %v8836_v26 }
 0x37e   :  { %8838 = vmatprep.subr.bf16.mxu1 %v9177_v60 }
 0x380   :  { %7988 = vmatmul.mubr.f32.vlgmr.msra.gmra.mrb[6].mxu1 %v3145_v30 }
 0x381   :  { %8840 = vmatpush3.bf16.msra.mxu1 %v8839_v45  ;;  %7998 = vmatprep.mubr.msk.f32.mxu1 %vm9178_vm5, %v9176_v22 }
 0x382   :  { %8841 = vmatprep.subr.bf16.mxu1 %v9177_v60 }
 0x385   :  { %8843 = vmatpush3.bf16.msra.mxu1 %v8842_v51 }
 0x386   :  { %8844 = vmatprep.subr.bf16.mxu1 %v9177_v60 }
 0x388   :  { %7999 = vmatmul.mubr.f32.vlgmr.msra.gmra.mrb[6].mxu1 %v3146_v34 }
 0x389   :  { %8846 = vmatpush3.bf16.msra.mxu1 %v10029_v10  ;;  %8009 = vmatprep.mubr.msk.f32.mxu1 %vm9178_vm5, %v9176_v22 }
 0x38a   :  { %8847 = vmatprep.subr.bf16.mxu1 %v9177_v60 }
 0x38d   :  { %8849 = vmatpush3.bf16.msra.mxu1 %v10045_v39 }
 0x38e   :  { %8850 = vmatprep.subr.bf16.mxu1 %v9177_v60 }
 0x390   :  { %8010 = vmatmul.mubr.f32.vlgmr.msra.gmra.mrb[6].mxu1 %v3147_v53 }
 0x391   :  { %8852 = vmatpush3.bf16.msra.mxu1 %v8851_v62  ;;  %8020 = vmatprep.mubr.msk.f32.mxu1 %vm9178_vm5, %v9176_v22 }
 0x392   :  { %8853 = vmatprep.subr.bf16.mxu1 %v9177_v60 }
 0x395   :  { %8855 = vmatpush3.bf16.msra.mxu1 %v8854_v63 }
 0x396   :  { %8856 = vmatprep.subr.bf16.mxu1 %v9177_v60 }
 0x398   :  { %8021 = vmatmul.mubr.f32.vlgmr.msra.gmra.mrb[6].mxu1 %v3145_v30 }
 0x399   :  { %8858 = vmatpush3.bf16.msra.mxu1 %v10029_v10  ;;  %8031 = vmatprep.mubr.msk.f32.mxu1 %vm9178_vm5, %v9176_v22  ;;  %v3636_v10 = vand.u32 4294901760, %v3564_v17 }
 0x39a   :  { %8859 = vmatprep.subr.bf16.mxu1 %v9177_v60 }
 0x39b   :  { %v3637_v18 = vsub.f32 %v3564_v17, %v3636_v10 }
 0x39d   :  { %8861 = vmatpush3.bf16.msra.mxu1 %v10045_v39  ;;  %v3638_v19 = vand.u32 4294901760, %v3637_v18 }
 0x39e   :  { %8880 = vmatprep.subr.bf16.mxu1 %v9177_v60 }
 0x39f   :  { %v3639_v25 = vsub.f32 %v3637_v18, %v3638_v19 }
 0x3a0   :  { %8032 = vmatmul.mubr.f32.vlgmr.msra.gmra.mrb[6].mxu1 %v3145_v30 }
 0x3a1   :  { %8110 = vmatprep.mubr.msk.f32.mxu1 %vm9178_vm5, %v9176_v22  ;;  %v3640_v50 = vand.u32 4294901760, %v3639_v25 }
 0x473   :  { %v3557_v35 = vpop.f32.mrb[6].mxu1 }
 0x474   :  { %v8978_v39 = vadd.f32 %v6910_v20, %v3557_v35  ;;  %v8033_v43 = vpop.f32.mrb[7].mxu1 }
 0x476   :  { %v3568_v48 = vsel %vm3566_vm8, %v8978_v39, 0 }
 0x477   :  { %v3571_v54 = vand.u32 4294901760, %v3568_v48 }
 0x479   :  { %v3648_v56 = vsub.f32 %v3568_v48, %v3571_v54  ;;  %8035 = vmatpush3.msra.mxu0 %v3571_v54 }
 0x47a   :  { %8037 = vmatmul.mubr.f32.vlgmr.msra.gmra.mrb[8].mxu0 %v3640_v50  ;;  %8039 = vmatprep.subr.mxu0 %v9176_v22 }
 0x47b   :  { %v3649_v57 = vand.u32 4294901760, %v3648_v56  ;;  %8041 = vmatprep.mubr.msk.f32.mxu0 %vm9178_vm5, %v9176_v22 }
 0x47d   :  { %v3650_v59 = vsub.f32 %v3648_v56, %v3649_v57 }
 0x47f   :  { %v3651_v4 = vand.u32 4294901760, %v3650_v59 }
 0x481   :  { %8040 = vmatpush3.msra.mxu0 %v3651_v4 }
 0x482   :  { %8042 = vmatmul.mubr.f32.vlgmr.msra.gmra.mrb[8].mxu0 %v3636_v10  ;;  %8044 = vmatprep.subr.mxu0 %v9176_v22 }
 0x483   :  { %8045 = vmatpush3.msra.mxu0 %v3648_v56  ;;  %8046 = vmatprep.mubr.msk.f32.mxu0 %vm9178_vm5, %v9176_v22 }
 0x484   :  { %8049 = vmatprep.subr.mxu0 %v9176_v22 }
 0x48a   :  { %8047 = vmatmul.mubr.f32.vlgmr.msra.gmra.mrb[8].mxu0 %v3637_v18 }
 0x48b   :  { %8050 = vmatpush3.msra.mxu0 %v3571_v54  ;;  %8051 = vmatprep.mubr.msk.f32.mxu0 %vm9178_vm5, %v9176_v22 }
 0x48c   :  { %8054 = vmatprep.subr.mxu0 %v9176_v22 }
 0x492   :  { %8052 = vmatmul.mubr.f32.vlgmr.msra.gmra.mrb[8].mxu0 %v3638_v19 }
 0x493   :  { %8055 = vmatpush3.msra.mxu0 %v3649_v57  ;;  %8056 = vmatprep.mubr.msk.f32.mxu0 %vm9178_vm5, %v9176_v22 }
 0x494   :  { %8059 = vmatprep.subr.mxu0 %v9176_v22 }
 0x49a   :  { %8057 = vmatmul.mubr.f32.vlgmr.msra.gmra.mrb[8].mxu0 %v3636_v10 }
 0x49b   :  { %8060 = vmatpush3.msra.mxu0 %v3571_v54  ;;  %8061 = vmatprep.mubr.msk.f32.mxu0 %vm9178_vm5, %v9176_v22 }
 0x49c   :  { %8862 = vmatprep.subr.bf16.mxu0 %v9177_v60 }
 0x4a2   :  { %8062 = vmatmul.mubr.f32.vlgmr.msra.gmra.mrb[8].mxu0 %v3636_v10 }
 0x4a3   :  { %8864 = vmatpush3.bf16.xpose.msra.mxu0 %v8863_v6  ;;  %8068 = vmatprep.mubr.msk.f32.mxu0 %vm9178_vm5, %v9176_v22 }
 0x4a4   :  { %8865 = vmatprep.subr.bf16.mxu0 %v9177_v60 }
 0x575   :  { %v4012_v9 = vpop.f32.mrb[8].mxu0 }
 0x576   :  { %v4017_v15 = vmul.f32 0.35355338, %v4012_v9  ;;  %v8063_v24 = vpop.f32.mrb[9].mxu0 }
 0x578   :  { %v4018_v26 = vmul.f32 %v4017_v15, %v10162_v13 }
 0x57a   :  { %v4021_v45 = vsel %vm1516_vm4, %v4018_v26, 0 }
 0x57b   :  { %v4096_v51 = vand.u32 4294901760, %v4021_v45 }
 0x57d   :  { %v4097_v62 = vsub.f32 %v4021_v45, %v4096_v51 }
 0x57f   :  { %v4098_v63 = vand.u32 4294901760, %v4097_v62 }
 0x581   :  { %v4099_v0 = vsub.f32 %v4097_v62, %v4098_v63 }
 0x583   :  { %v4100_v46 = vand.u32 4294901760, %v4099_v0 }
 0x585   :  { %8069 = vmatmul.mubr.f32.vlgmr.msra.gmra.mrb[10].mxu0 %v4100_v46 }
 0x586   :  { %8867 = vmatpush3.bf16.xpose.msra.mxu0 %v10101_v1  ;;  %8075 = vmatprep.mubr.msk.f32.mxu0 %vm9178_vm5, %v9176_v22 }
 0x587   :  { %8868 = vmatprep.subr.bf16.mxu0 %v9177_v60 }
 0x58d   :  { %8076 = vmatmul.mubr.f32.vlgmr.msra.gmra.mrb[10].mxu0 %v4096_v51 }
 0x58e   :  { %8870 = vmatpush3.bf16.xpose.msra.mxu0 %v8869_v40  ;;  %8082 = vmatprep.mubr.msk.f32.mxu0 %vm9178_vm5, %v9176_v22 }
 0x58f   :  { %8871 = vmatprep.subr.bf16.mxu0 %v9177_v60 }
 0x595   :  { %8083 = vmatmul.mubr.f32.vlgmr.msra.gmra.mrb[10].mxu0 %v4097_v62 }
 0x596   :  { %8873 = vmatpush3.bf16.xpose.msra.mxu0 %v8863_v6  ;;  %8089 = vmatprep.mubr.msk.f32.mxu0 %vm9178_vm5, %v9176_v22 }
 0x597   :  { %8874 = vmatprep.subr.bf16.mxu0 %v9177_v60 }
 0x59d   :  { %8090 = vmatmul.mubr.f32.vlgmr.msra.gmra.mrb[10].mxu0 %v4098_v63 }
 0x59e   :  { %8876 = vmatpush3.bf16.xpose.msra.mxu0 %v10099_v49  ;;  %8096 = vmatprep.mubr.msk.f32.mxu0 %vm9178_vm5, %v9176_v22 }
 0x59f   :  { %8877 = vmatprep.subr.bf16.mxu0 %v9177_v60 }
 0x5a5   :  { %8097 = vmatmul.mubr.f32.vlgmr.msra.gmra.mrb[10].mxu0 %v4096_v51 }
 0x5a6   :  { %8879 = vmatpush3.bf16.xpose.msra.mxu0 %v8863_v6  ;;  %8103 = vmatprep.mubr.msk.f32.mxu0 %vm9178_vm5, %v9176_v22 }
 0x5a7   :  { %8898 = vmatprep.subr.bf16.mxu0 %v9177_v60 }
 0x5ad   :  { %8104 = vmatmul.mubr.f32.vlgmr.msra.gmra.mrb[10].mxu0 %v4096_v51 }
 0x5ae   :  { %8186 = vmatprep.mubr.msk.f32.mxu0 %vm9178_vm5, %v9176_v22 }
 0x680   :  { %v4484_v44 = vpop.f32.mrb[10].mxu0 }
 0x681   :  { %v8979_v16 = vadd.f32 %v4484_v44, %v4019_v47  ;;  %v8105_v31 = vpop.f32.mrb[11].mxu0 }
 0x683   :  { %v4488_v36 = vsel %vm2599_vm6, %v8979_v16, -inf }
 0x684   :  { %4489 = vmax.xlane.f32.xlu0 %v4488_v36 }
 0x69a   :  { %4499 = vrot.lane.b32.xlu0 %v10071_v27, %s9179_s21 }
 0x69e   :  { %6388 = vrot.lane.b32.xlu0 %v10071_v27, %s9180_s1 }
 0x6a2   :  { %5918 = vrot.lane.b32.xlu0 %v10071_v27, %s9181_s22 }
 0x711   :  { %v4490_v37 = vpop.xlane.xlu0 %4489 }
 0x712   :  { %v4491_v52 = vsub.f32 %v8979_v16, %v4490_v37 }
 0x714   :  { %v4492_v58 = vmul.f32 1.442695, %v4491_v52 }
 0x715   :  { %v4500_v29 = vpop.permute.xlu0 %4499 }
 0x716   :  { %9122 = vpow2.f32 %v4492_v58  ;;  %v4509_v41 = vand.u32 4294901760, %v4500_v29 }
 0x718   :  { %v4587_v14 = vsub.f32 %v4500_v29, %v4509_v41 }
 0x719   :  { %v6389_v61 = vpop.permute.xlu0 %6388 }
 0x71a   :  { %v10200_v2 = vsel %vm1516_vm4, %v6389_v61, 0  ;;  %v4588_v10 = vand.u32 4294901760, %v4587_v14 }
 0x71b   :  { %v6397_v38 = vand.u32 4294901760, %v10200_v2 }
 0x71c   :  { %v4589_v59 = vsub.f32 %v4587_v14, %v4588_v10 }
 0x71d   :  { %v5919_v27 = vpop.permute.xlu0 %5918  ;;  %v10209_v42 = vsub.f32 %v10200_v2, %v6397_v38 }
 0x71e   :  { %v10204_v32 = vsel %vm1516_vm4, %v5919_v27, 0  ;;  %v4590_v47 = vand.u32 4294901760, %v4589_v59 }
 0x71f   :  { %v6476_v7 = vand.u32 4294901760, %v10209_v42 }
 0x720   :  { %v9123_v28 = vpop.eup %9122 }
 0x721   :  { %v4494_v55 = vsel %vm2599_vm6, %v9123_v28, 0.0  ;;  %v6477_v18 = vsub.f32 %v10209_v42, %v6476_v7 }
 0x722   :  { %4495 = vadd.xlane.f32.xlu1 %v4494_v55 }
 0x723   :  { %v6478_v4 = vand.u32 4294901760, %v6477_v18 }
 0x733   :  { %4501 = vrot.lane.b32.xlu1 %v10069_v3, %s9179_s21 }
 0x737   :  { %6390 = vrot.lane.b32.xlu1 %v10069_v3, %s9180_s1 }
 0x73b   :  { %5920 = vrot.lane.b32.xlu1 %v10069_v3, %s9181_s22  ;;  %v5930_v3 = vand.u32 4294901760, %v10204_v32 }
 0x73d   :  { %v10218_v8 = vsub.f32 %v10204_v32, %v5930_v3  ;;  %v5420_v32 = vld [vmem:[%s10437_s11 + $0x8] sm:$0xff] }
 0x73f   :  { %v6009_v19 = vand.u32 4294901760, %v10218_v8 }
 0x741   :  { %v6010_v9 = vsub.f32 %v10218_v8, %v6009_v19 }
 0x743   :  { %v6011_v44 = vand.u32 4294901760, %v6010_v9 }
 0x7af   :  { %v4496_v33 = vpop.xlane.xlu1 %4495 }
 0x7b0   :  { %9124 = vrcp.f32 %v4496_v33 }
 0x7b3   :  { %v4502_v40 = vpop.permute.xlu1 %4501 }
 0x7b4   :  { %v4512_v49 = vand.u32 4294901760, %v4502_v40 }
 0x7b6   :  { %v10212_v21 = vpack.c.bf16 %v4512_v49, %v4509_v41  ;;  %v4594_v23 = vsub.f32 %v4502_v40, %v4512_v49 }
 0x7b7   :  { %v6391_v1 = vpop.permute.xlu1 %6390 }
 0x7b8   :  { %v10221_v30 = vsel %vm1516_vm4, %v6391_v1, 0  ;;  %8882 = vmatpush3.bf16.msra.mxu1 %v10212_v21  ;;  %v4595_v11 = vand.u32 4294901760, %v4594_v23  ;;  %v8887_v52 = vpack.c.bf16 %v4594_v23, %v4587_v14 }
 0x7b9   :  { %v6400_v34 = vand.u32 4294901760, %v10221_v30  ;;  %8883 = vmatprep.subr.bf16.mxu1 %v9177_v60 }
 0x7ba   :  { %v9125_v53 = vpop.eup %9124  ;;  %v4596_v50 = vsub.f32 %v4594_v23, %v4595_v11  ;;  %v8893_v58 = vpack.c.bf16 %v4595_v11, %v4588_v10 }
 0x7bb   :  { %v4498_v5 = vmul.f32 %v9125_v53, %v9123_v28  ;;  %v10229_v12 = vsub.f32 %v10221_v30, %v6400_v34  ;;  %v5921_v17 = vpop.permute.xlu1 %5920  ;;  %v4967_v28 = vld [vmem:[%s10441_s15] sm:$0x3] }
 0x7bc   :  { %v10234_v20 = vsel %vm1516_vm4, %v5921_v17, 0  ;;  %v4597_v51 = vand.u32 4294901760, %v4596_v50  ;;  %v4971_v55 = vsel %vm4969_vm9, %v4967_v28, 0  ;;  %v5437_v17 = vand.u32 4294901760, %v5420_v32 }
 0x7bd   :  { %v6483_v25 = vand.u32 4294901760, %v10229_v12  ;;  %v8959_v35 = vpack.c.bf16 %v10229_v12, %v10209_v42  ;;  %v5933_v39 = vand.u32 4294901760, %v10234_v20  ;;  %v4506_v43 = vsel %vm2599_vm6, %v4498_v5, 0  ;;  %v5419_v5 = vld [vmem:[%s10437_s11] sm:$0xff] }
 0x7be   :  { %v4575_v48 = vand.u32 4294901760, %v4506_v43  ;;  %v8884_v36 = vpack.c.bf16 %v4597_v51, %v4590_v47  ;;  %v5039_v29 = vand.u32 4294901760, %v4971_v55  ;;  %v5434_v11 = vand.u32 4294901760, %v5419_v5 }
 0x7bf   :  { %v6484_v54 = vsub.f32 %v10229_v12, %v6483_v25  ;;  %v10245_v56 = vsub.f32 %v10234_v20, %v5933_v39  ;;  %v10247_v57 = vpack.c.bf16 %v6483_v25, %v6476_v7  ;;  %v5521_v18 = vsub.f32 %v5420_v32, %v5437_v17  ;;  %v5422_v20 = vld [vmem:[%s10437_s11 + $0x18] sm:$0xff] }
 0x7c0   :  { %v4576_v6 = vsub.f32 %v4506_v43, %v4575_v48  ;;  %v5040_v61 = vsub.f32 %v4971_v55, %v5039_v29  ;;  %v5514_v10 = vsub.f32 %v5419_v5, %v5434_v11 }
 0x7c1   :  { %v6485_v15 = vand.u32 4294901760, %v6484_v54  ;;  %v6016_v24 = vand.u32 4294901760, %v10245_v56  ;;  %v8941_v26 = vpack.c.bf16 %v10245_v56, %v10218_v8 }
 0x7c2   :  { %v4577_v45 = vand.u32 4294901760, %v4576_v6  ;;  %v5041_v27 = vand.u32 4294901760, %v5040_v61  ;;  %v5515_v43 = vand.u32 4294901760, %v5514_v10 }
 0x7c3   :  { %v6017_v62 = vsub.f32 %v10245_v56, %v6016_v24  ;;  %v10254_v63 = vpack.c.bf16 %v6485_v15, %v6478_v4  ;;  %v10256_v0 = vpack.c.bf16 %v6016_v24, %v6009_v19  ;;  %v5421_v19 = vld [vmem:[%s10437_s11 + $0x10] sm:$0xff] }
 0x7c4   :  { %v4578_v46 = vsub.f32 %v4576_v6, %v4577_v45  ;;  %v5042_v33 = vsub.f32 %v5040_v61, %v5041_v27  ;;  %v5440_v25 = vand.u32 4294901760, %v5421_v19  ;;  %v5516_v4 = vsub.f32 %v5514_v10, %v5515_v43 }
 0x7c5   :  { %v6018_v16 = vand.u32 4294901760, %v6017_v62 }
 0x7c6   :  { %v4579_v31 = vand.u32 4294901760, %v4578_v46  ;;  %v5528_v54 = vsub.f32 %v5421_v19, %v5440_v25  ;;  %v5517_v9 = vand.u32 4294901760, %v5516_v4 }
 0x7c7   :  { %v10258_v37 = vpack.c.bf16 %v6018_v16, %v6011_v44 }
 0x7c8   :  { %8111 = vmatmul.mubr.f32.vlgmr.msra.gmra.mrb[8].mxu1 %v4579_v31  ;;  %v5529_v15 = vand.u32 4294901760, %v5528_v54  ;;  %v8911_v31 = vpack.c.bf16 %v5521_v18, %v5514_v10 }
 0x7c9   :  { %8885 = vmatpush3.bf16.msra.mxu1 %v8884_v36  ;;  %8117 = vmatprep.mubr.msk.f32.mxu1 %vm9178_vm5, %v9176_v22 }
 0x7ca   :  { %8886 = vmatprep.subr.bf16.mxu1 %v9177_v60  ;;  %v5530_v51 = vsub.f32 %v5528_v54, %v5529_v15 }
 0x7cc   :  { %v5531_v47 = vand.u32 4294901760, %v5530_v51 }
 0x7d0   :  { %8118 = vmatmul.mubr.f32.vlgmr.msra.gmra.mrb[8].mxu1 %v4575_v48 }
 0x7d1   :  { %8888 = vmatpush3.bf16.msra.mxu1 %v8887_v52  ;;  %8124 = vmatprep.mubr.msk.f32.mxu1 %vm9178_vm5, %v9176_v22 }
 0x7d2   :  { %8889 = vmatprep.subr.bf16.mxu1 %v9177_v60 }
 0x7d8   :  { %8125 = vmatmul.mubr.f32.vlgmr.msra.gmra.mrb[8].mxu1 %v4576_v6 }
 0x7d9   :  { %8891 = vmatpush3.bf16.msra.mxu1 %v10212_v21  ;;  %8131 = vmatprep.mubr.msk.f32.mxu1 %vm9178_vm5, %v9176_v22 }
 0x7da   :  { %8892 = vmatprep.subr.bf16.mxu1 %v9177_v60 }
 0x7e0   :  { %8132 = vmatmul.mubr.f32.vlgmr.msra.gmra.mrb[8].mxu1 %v4577_v45 }
 0x7e1   :  { %8894 = vmatpush3.bf16.msra.mxu1 %v8893_v58  ;;  %8138 = vmatprep.mubr.msk.f32.mxu1 %vm9178_vm5, %v9176_v22 }
 0x7e2   :  { %8895 = vmatprep.subr.bf16.mxu1 %v9177_v60 }
 0x7e8   :  { %8139 = vmatmul.mubr.f32.vlgmr.msra.gmra.mrb[8].mxu1 %v4575_v48 }
 0x7e9   :  { %8897 = vmatpush3.bf16.msra.mxu1 %v10212_v21  ;;  %8145 = vmatprep.mubr.msk.f32.mxu1 %vm9178_vm5, %v9176_v22  ;;  %v5043_v21 = vand.u32 4294901760, %v5042_v33 }
 0x7ea   :  { %8148 = vmatprep.subr.mxu1 %v9176_v22 }
 0x7f0   :  { %8146 = vmatmul.mubr.f32.vlgmr.msra.gmra.mrb[8].mxu1 %v4575_v48  ;;  %v5522_v48 = vand.u32 4294901760, %v5521_v18 }
 0x7f1   :  { %8150 = vmatprep.mubr.msk.f32.mxu1 %vm9178_vm5, %v9176_v22 }
 0x7f2   :  { %v5523_v6 = vsub.f32 %v5521_v18, %v5522_v48  ;;  %v8923_v52 = vpack.c.bf16 %v5522_v48, %v5515_v43 }
 0x7f4   :  { %v5524_v45 = vand.u32 4294901760, %v5523_v6 }
 0x7f6   :  { %v8905_v46 = vpack.c.bf16 %v5524_v45, %v5517_v9 }
 0x8c3   :  { %v4963_v40 = vpop.f32.mrb[8].mxu1 }
 0x8c4   :  { %v4968_v41 = vmul.f32 %v4963_v40, %v10162_v13  ;;  %v8147_v49 = vpop.f32.mrb[9].mxu1  ;;  %v10303_v13 = vpack.c.bf16 %v5933_v39, %v5930_v3  ;;  %v10315_v3 = vpack.c.bf16 %v5437_v17, %v5434_v11  ;;  %v5443_v39 = vand.u32 4294901760, %v5422_v20 }
 0x8c5   :  { %v8953_v49 = vpack.c.bf16 %v6400_v34, %v6397_v38 }
 0x8c6   :  { %v4974_v23 = vand.u32 4294901760, %v4968_v41  ;;  %8900 = vmatpush3.bf16.msra.mxu0 %v10315_v3  ;;  %v8902_v50 = vpack.c.bf16 %v5443_v39, %v5440_v25  ;;  %v5535_v59 = vsub.f32 %v5422_v20, %v5443_v39 }
 0x8c7   :  { %8901 = vmatprep.subr.bf16.mxu0 %v9177_v60 }
 0x8c8   :  { %v5051_v1 = vsub.f32 %v4968_v41, %v4974_v23  ;;  %8149 = vmatpush3.msra.mxu1 %v4974_v23  ;;  %v5536_v24 = vand.u32 4294901760, %v5535_v59  ;;  %v8914_v36 = vpack.c.bf16 %v5535_v59, %v5528_v54 }
 0x8c9   :  { %8151 = vmatmul.mubr.f32.vlgmr.msra.gmra.mrb[10].mxu1 %v5043_v21  ;;  %8153 = vmatprep.subr.mxu1 %v9176_v22  ;;  %v6911_v21 = vld [vmem:[%s10438_s12] ss:$0 sm:$0xff]  ;;  %s9182_s12 = smov [#allocation4]  }
 0x8ca   :  { %v5052_v14 = vand.u32 4294901760, %v5051_v1  ;;  %8155 = vmatprep.mubr.msk.f32.mxu1 %vm9178_vm5, %v9176_v22  ;;  %8903 = vmatpush3.bf16.msra.mxu0 %v8902_v50  ;;  %v5537_v62 = vsub.f32 %v5535_v59, %v5536_v24  ;;  %v8926_v58 = vpack.c.bf16 %v5536_v24, %v5529_v15  ;;  %s6877_s27 = sshll.u32 %s9182_s12, 4  ;;  %s6878_s27 = int_to_ptr.vmem [resolvable:$true] %s6877_s27 }
 0x8cb   :  { %8904 = vmatprep.subr.bf16.mxu0 %v9177_v60  ;;  %s9126_s9 = scalar_lea.vmem %s6878_s27, 256  ;;  %p9131_p1 = scmp.lt.s32.totalorder %s6878_s27, %s6878_s27 }
 0x8cc   :  { %v5053_v7 = vsub.f32 %v5051_v1, %v5052_v14  ;;  %v5538_v44 = vand.u32 4294901760, %v5537_v62  ;;  %p9127_p0 = scmp.ne.s32.totalorder %s6878_s27, %s9126_s9  ;;  %p9132_p2 = scmp.lt.s32.totalorder %s9126_s9, %s9126_s9 }
 0x8ce   :  { %v5054_v53 = vand.u32 4294901760, %v5053_v7  ;;  %v8908_v16 = vpack.c.bf16 %v5538_v44, %v5531_v47  ;;  %p9133_p3 = por %p9132_p2, %p9131_p1 }
 0x8d0   :  { %8154 = vmatpush3.msra.mxu1 %v5054_v53  ;;  %p9134_p4 = pnand %p9133_p3, %p9127_p0 }
 0x8d1   :  { %8156 = vmatmul.mubr.f32.vlgmr.msra.gmra.mrb[10].mxu1 %v5039_v29  ;;  %8158 = vmatprep.subr.mxu1 %v9176_v22 }
 0x8d2   :  { %8159 = vmatpush3.msra.mxu1 %v5051_v1  ;;  %8160 = vmatprep.mubr.msk.f32.mxu1 %vm9178_vm5, %v9176_v22 }
 0x8d3   :  { %8163 = vmatprep.subr.mxu1 %v9176_v22 }
 0x8d9   :  { %8161 = vmatmul.mubr.f32.vlgmr.msra.gmra.mrb[10].mxu1 %v5040_v61 }
 0x8da   :  { %8164 = vmatpush3.msra.mxu1 %v4974_v23  ;;  %8165 = vmatprep.mubr.msk.f32.mxu1 %vm9178_vm5, %v9176_v22 }
 0x8db   :  { %8168 = vmatprep.subr.mxu1 %v9176_v22 }
 0x8e1   :  { %8166 = vmatmul.mubr.f32.vlgmr.msra.gmra.mrb[10].mxu1 %v5041_v27 }
 0x8e2   :  { %8169 = vmatpush3.msra.mxu1 %v5052_v14  ;;  %8170 = vmatprep.mubr.msk.f32.mxu1 %vm9178_vm5, %v9176_v22 }
 0x8e3   :  { %8173 = vmatprep.subr.mxu1 %v9176_v22 }
 0x8e9   :  { %8171 = vmatmul.mubr.f32.vlgmr.msra.gmra.mrb[10].mxu1 %v5039_v29 }
 0x8ea   :  { %8174 = vmatpush3.msra.mxu1 %v4974_v23  ;;  %8175 = vmatprep.mubr.msk.f32.mxu1 %vm9178_vm5, %v9176_v22 }
 0x8eb   :  { %8934 = vmatprep.subr.bf16.mxu1 %v9177_v60 }
 0x8f1   :  { %8176 = vmatmul.mubr.f32.vlgmr.msra.gmra.mrb[10].mxu1 %v5039_v29 }
 0x8f2   :  { %8936 = vmatpush3.bf16.xpose.msra.mxu1 %v10303_v13  ;;  %8248 = vmatprep.mubr.msk.f32.mxu1 %vm9178_vm5, %v9176_v22 }
 0x8f3   :  { %8937 = vmatprep.subr.bf16.mxu1 %v9177_v60 }
 0x9c4   :  { %v5415_v28 = vpop.f32.mrb[10].mxu1 }
 0x9c5   :  { %v5431_v55 = vsel %vm1516_vm4, %v5415_v28, 0  ;;  %v8177_v29 = vpop.f32.mrb[11].mxu1 }
 0x9c6   :  { %v5502_v61 = vand.u32 4294901760, %v5431_v55 }
 0x9c8   :  { %v5503_v27 = vsub.f32 %v5431_v55, %v5502_v61 }
 0x9ca   :  { %v5504_v33 = vand.u32 4294901760, %v5503_v27 }
 0x9cc   :  { %v5505_v40 = vsub.f32 %v5503_v27, %v5504_v33 }
 0x9ce   :  { %v5506_v41 = vand.u32 4294901760, %v5505_v40 }
 0x9d0   :  { %8187 = vmatmul.mubr.f32.vlgmr.msra.gmra.mrb[12].mxu0 %v5506_v41 }
 0x9d1   :  { %8906 = vmatpush3.bf16.msra.mxu0 %v8905_v46  ;;  %8197 = vmatprep.mubr.msk.f32.mxu0 %vm9178_vm5, %v9176_v22 }
 0x9d2   :  { %8907 = vmatprep.subr.bf16.mxu0 %v9177_v60 }
 0x9d5   :  { %8909 = vmatpush3.bf16.msra.mxu0 %v8908_v16 }
 0x9d6   :  { %8910 = vmatprep.subr.bf16.mxu0 %v9177_v60 }
 0x9d8   :  { %8198 = vmatmul.mubr.f32.vlgmr.msra.gmra.mrb[12].mxu0 %v5502_v61 }
 0x9d9   :  { %8912 = vmatpush3.bf16.msra.mxu0 %v8911_v31  ;;  %8208 = vmatprep.mubr.msk.f32.mxu0 %vm9178_vm5, %v9176_v22 }
 0x9da   :  { %8913 = vmatprep.subr.bf16.mxu0 %v9177_v60 }
 0x9dd   :  { %8915 = vmatpush3.bf16.msra.mxu0 %v8914_v36 }
 0x9de   :  { %8916 = vmatprep.subr.bf16.mxu0 %v9177_v60 }
 0x9e0   :  { %8209 = vmatmul.mubr.f32.vlgmr.msra.gmra.mrb[12].mxu0 %v5503_v27 }
 0x9e1   :  { %8918 = vmatpush3.bf16.msra.mxu0 %v10315_v3  ;;  %8219 = vmatprep.mubr.msk.f32.mxu0 %vm9178_vm5, %v9176_v22 }
 0x9e2   :  { %8919 = vmatprep.subr.bf16.mxu0 %v9177_v60 }
 0x9e5   :  { %8921 = vmatpush3.bf16.msra.mxu0 %v8902_v50 }
 0x9e6   :  { %8922 = vmatprep.subr.bf16.mxu0 %v9177_v60 }
 0x9e8   :  { %8220 = vmatmul.mubr.f32.vlgmr.msra.gmra.mrb[12].mxu0 %v5504_v33 }
 0x9e9   :  { %8924 = vmatpush3.bf16.msra.mxu0 %v8923_v52  ;;  %8230 = vmatprep.mubr.msk.f32.mxu0 %vm9178_vm5, %v9176_v22 }
 0x9ea   :  { %8925 = vmatprep.subr.bf16.mxu0 %v9177_v60 }
 0x9ed   :  { %8927 = vmatpush3.bf16.msra.mxu0 %v8926_v58 }
 0x9ee   :  { %8928 = vmatprep.subr.bf16.mxu0 %v9177_v60 }
 0x9f0   :  { %8231 = vmatmul.mubr.f32.vlgmr.msra.gmra.mrb[12].mxu0 %v5502_v61 }
 0x9f1   :  { %8930 = vmatpush3.bf16.msra.mxu0 %v10315_v3  ;;  %8241 = vmatprep.mubr.msk.f32.mxu0 %vm9178_vm5, %v9176_v22 }
 0x9f2   :  { %8931 = vmatprep.subr.bf16.mxu0 %v9177_v60 }
 0x9f5   :  { %8933 = vmatpush3.bf16.msra.mxu0 %v8902_v50 }
 0x9f6   :  { %8952 = vmatprep.subr.bf16.mxu0 %v9177_v60 }
 0x9f8   :  { %8242 = vmatmul.mubr.f32.vlgmr.msra.gmra.mrb[12].mxu0 %v5502_v61 }
 0x9f9   :  { %8290 = vmatprep.mubr.msk.f32.mxu0 %vm9178_vm5, %v9176_v22 }
 0x9fe   :  { %8954 = vmatpush3.bf16.xpose.msra.mxu0 %v8953_v49 }
 0x9ff   :  { %8955 = vmatprep.subr.bf16.mxu0 %v9177_v60 }
 0xacb   :  { %v5914_v23 = vpop.f32.mrb[12].mxu0 }
 0xacc   :  { %v8980_v1 = vadd.f32 %v6911_v21, %v5914_v23  ;;  %v8243_v14 = vpop.f32.mrb[13].mxu0 }
 0xace   :  { %v5923_v7 = vsel %vm1516_vm4, %v8980_v1, 0 }
 0xacf   :  { %v5996_v53 = vand.u32 4294901760, %v5923_v7 }
 0xad1   :  { %v5997_v5 = vsub.f32 %v5923_v7, %v5996_v53 }
 0xad3   :  { %v5998_v32 = vand.u32 4294901760, %v5997_v5 }
 0xad5   :  { %v5999_v11 = vsub.f32 %v5997_v5, %v5998_v32 }
 0xad7   :  { %v6000_v2 = vand.u32 4294901760, %v5999_v11 }
 0xad9   :  { %8249 = vmatmul.mubr.f32.vlgmr.msra.gmra.mrb[12].mxu1 %v6000_v2  ;;  %8291 = vmatmul.mubr.f32.vlgmr.msra.gmra.mrb[14].mxu0 %v6000_v2 }
 0xada   :  { %8939 = vmatpush3.bf16.xpose.msra.mxu1 %v10258_v37  ;;  %8957 = vmatpush3.bf16.xpose.msra.mxu0 %v10254_v63 }
 0xadb   :  { %8255 = vmatprep.mubr.msk.f32.mxu1 %vm9178_vm5, %v9176_v22  ;;  %8940 = vmatprep.subr.bf16.mxu1 %v9177_v60 }
 0xadc   :  { %8297 = vmatprep.mubr.msk.f32.mxu0 %vm9178_vm5, %v9176_v22  ;;  %8958 = vmatprep.subr.bf16.mxu0 %v9177_v60 }
 0xae1   :  { %8256 = vmatmul.mubr.f32.vlgmr.msra.gmra.mrb[12].mxu1 %v5996_v53  ;;  %8298 = vmatmul.mubr.f32.vlgmr.msra.gmra.mrb[14].mxu0 %v5996_v53 }
 0xae2   :  { %8942 = vmatpush3.bf16.xpose.msra.mxu1 %v8941_v26  ;;  %8960 = vmatpush3.bf16.xpose.msra.mxu0 %v8959_v35 }
 0xae3   :  { %8262 = vmatprep.mubr.msk.f32.mxu1 %vm9178_vm5, %v9176_v22  ;;  %8943 = vmatprep.subr.bf16.mxu1 %v9177_v60 }
 0xae4   :  { %8304 = vmatprep.mubr.msk.f32.mxu0 %vm9178_vm5, %v9176_v22  ;;  %8961 = vmatprep.subr.bf16.mxu0 %v9177_v60 }
 0xae9   :  { %8263 = vmatmul.mubr.f32.vlgmr.msra.gmra.mrb[12].mxu1 %v5997_v5  ;;  %8305 = vmatmul.mubr.f32.vlgmr.msra.gmra.mrb[14].mxu0 %v5997_v5 }
 0xaea   :  { %8945 = vmatpush3.bf16.xpose.msra.mxu1 %v10303_v13  ;;  %8963 = vmatpush3.bf16.xpose.msra.mxu0 %v8953_v49 }
 0xaeb   :  { %8269 = vmatprep.mubr.msk.f32.mxu1 %vm9178_vm5, %v9176_v22  ;;  %8946 = vmatprep.subr.bf16.mxu1 %v9177_v60 }
 0xaec   :  { %8311 = vmatprep.mubr.msk.f32.mxu0 %vm9178_vm5, %v9176_v22  ;;  %8964 = vmatprep.subr.bf16.mxu0 %v9177_v60 }
 0xaf1   :  { %8270 = vmatmul.mubr.f32.vlgmr.msra.gmra.mrb[12].mxu1 %v5998_v32  ;;  %8312 = vmatmul.mubr.f32.vlgmr.msra.gmra.mrb[14].mxu0 %v5998_v32 }
 0xaf2   :  { %8948 = vmatpush3.bf16.xpose.msra.mxu1 %v10256_v0  ;;  %8966 = vmatpush3.bf16.xpose.msra.mxu0 %v10247_v57 }
 0xaf3   :  { %8276 = vmatprep.mubr.msk.f32.mxu1 %vm9178_vm5, %v9176_v22  ;;  %8949 = vmatprep.subr.bf16.mxu1 %v9177_v60 }
 0xaf4   :  { %8318 = vmatprep.mubr.msk.f32.mxu0 %vm9178_vm5, %v9176_v22  ;;  %8967 = vmatprep.subr.bf16.mxu0 %v9177_v60 }
 0xaf9   :  { %8277 = vmatmul.mubr.f32.vlgmr.msra.gmra.mrb[12].mxu1 %v5996_v53  ;;  %8319 = vmatmul.mubr.f32.vlgmr.msra.gmra.mrb[14].mxu0 %v5996_v53 }
 0xafa   :  { %8951 = vmatpush3.bf16.xpose.msra.mxu1 %v10303_v13  ;;  %8969 = vmatpush3.bf16.xpose.msra.mxu0 %v8953_v49 }
 0xafb   :  { %8283 = vmatprep.mubr.msk.f32.mxu1 %vm9178_vm5, %v9176_v22  ;;  %8325 = vmatprep.mubr.msk.f32.mxu0 %vm9178_vm5, %v9176_v22 }
 0xb01   :  { %8284 = vmatmul.mubr.f32.vlgmr.msra.gmra.mrb[12].mxu1 %v5996_v53  ;;  %8326 = vmatmul.mubr.f32.vlgmr.msra.gmra.mrb[14].mxu0 %v5996_v53 }
 0xb02   :  { %9137 = shalt.err (!%p9134_p4)
}
 0xb03   :  { %s9138_s29 = scalar_lea.hbm %s10445_s19, 256 }
 0xb04   :  { %p9139_p5 = scmp.ne.s32.totalorder %s10445_s19, %s9138_s29  ;;  %p9142_p6 = scmp.lt.u32.totalorder %s9138_s29, %s10445_s19 }
 0xb06   :  { %p9144_p7 = pnand %p9142_p6, %p9139_p5 }
 0xb08   :  { %9147 = shalt.err (!%p9144_p7)
}
 0xb09   :  { %s9183_s10 = smov 128   ;;  %s9184_s14 = smov 8  }
 0xb0a   :  { %6883 = dma.vmem_to_hbm [thread:$0]  %s6878_s27, 256, %s10445_s19, [#allocation5], %s9183_s10, %s9183_s10, %s9184_s14  }
 0xb0b   :  { %s9185_s21 = smov 16   ;;  %s9186_s1 = smov [#allocation2]  }
 0xb0c   :  { %s6868_s22 = sshll.u32 %s9186_s1, 4  ;;  %s6869_s22 = int_to_ptr.vmem [resolvable:$true] %s6868_s22 }
 0xb0d   :  { %s9148_s17 = scalar_lea.vmem %s6869_s22, 32  ;;  %p9153_p9 = scmp.lt.s32.totalorder %s6869_s22, %s6869_s22 }
 0xb0e   :  { %p9149_p8 = scmp.ne.s32.totalorder %s6869_s22, %s9148_s17  ;;  %p9154_p10 = scmp.lt.s32.totalorder %s9148_s17, %s9148_s17 }
 0xb10   :  { %p9155_p11 = por %p9154_p10, %p9153_p9 }
 0xb12   :  { %p9156_p12 = pnand %p9155_p11, %p9149_p8 }
 0xbd4   :  { %v6384_v22 = vpop.f32.mrb[12].mxu1  ;;  %v6851_v60 = vpop.f32.mrb[14].mxu0 }
 0xbd5   :  { %v8285_v38 = vpop.f32.mrb[13].mxu1  ;;  %6856 = vrot.lane.b32.xlu0 %v6851_v60, %s9185_s21  ;;  %v8327_v42 = vpop.f32.mrb[15].mxu0 }
 0xc47   :  { %v6857_v8 = vpop.permute.xlu0 %6856 }
 0xc48   :  { %v6859_v30 = vsel %vm2599_vm6, %v6384_v22, %v6857_v8 }
 0xc49   :  { %v6860_v34 = vsel %vm1516_vm4, %v6859_v30, 0.0 }
 0xc4a   :  { %6861 = vst [vmem:[#allocation2] sm:$0x3] %v6860_v34 }
 0xc4b   :  { %9159 = shalt.err (!%p9156_p12)
}
 0xc4c   :  { %s9160_s15 = scalar_lea.hbm %s10444_s18, 32 }
 0xc4d   :  { %p9161_p13 = scmp.ne.s32.totalorder %s10444_s18, %s9160_s15  ;;  %p9164_p0 = scmp.lt.u32.totalorder %s9160_s15, %s10444_s18 }
 0xc4f   :  { %p9166_p1 = pnand %p9164_p0, %p9161_p13 }
 0xc51   :  { %9169 = shalt.err (!%p9166_p1)
}
 0xc52   :  { %6871 = dma.vmem_to_hbm [thread:$0]  %s6869_s22, 32, %s10444_s18, [#allocation3]  }
 0xc53   :  { %9170 = dma.done.wait [#allocation3], 32  }
 0xc54   :  { %9171 = vsyncadd [#allocation3], 4294967264 }
 0xc55   :  { %9172 = dma.done.wait [#allocation5], 256  }
 0xc56   :  { %9173 = vsyncadd [#allocation5], 4294967040 }
 0xc57   :  { %6890 = vsyncpa [#allocation3], 1 }
 0xc58   :  { %6891 = vsyncpa [#allocation5], 1 }

</bundles_post_ra>
